<compile_context>
chip_gen: v7x
topology: tpu7x:2x2x1
jax: 0.10.0
libtpu: 0.0.40
codegen_flags: <defaults>
</compile_context>

<pallas_src>
import functools

import jax
import jax.numpy as jnp
from jax.experimental import pallas as pl
from jax.experimental.pallas import tpu as pltpu


def _round_up(x, m):
    return (x + m - 1) // m * m


def _pick_tile(n_p, t_max, min_tiles=1):
    """Largest multiple of 128 dividing n_p, <= t_max, leaving >= min_tiles tiles."""
    best = 128
    t = 128
    limit = min(t_max, max(128, n_p // max(min_tiles, 1)))
    while t <= limit:
        if n_p % t == 0:
            best = t
        t += 128
    return best


# --------------------------------------------------------------------------
# Kernel 1: XW = (X @ W) * d_out^-1/2  -> bf16 (feeds the bf16 MXU path)
# --------------------------------------------------------------------------
def _xw_kernel(x_ref, w_ref, cscale_ref, o_ref):
    xw = jnp.dot(x_ref[...], w_ref[...], preferred_element_type=jnp.float32)
    o_ref[...] = (xw * cscale_ref[...]).astype(o_ref.dtype)   # (tm,1) broadcast


def _xw_matmul(x, w, c_scale, *, tm):
    n_p, f_in_p = x.shape
    f_out_p = w.shape[1]
    return pl.pallas_call(
        _xw_kernel,
        out_shape=jax.ShapeDtypeStruct((n_p, f_out_p), jnp.bfloat16),
        grid=(n_p // tm,),
        in_specs=[
            pl.BlockSpec((tm, f_in_p), lambda i: (i, 0)),
            pl.BlockSpec((f_in_p, f_out_p), lambda i: (0, 0)),
            pl.BlockSpec((tm, 1), lambda i: (i, 0)),
        ],
        out_specs=pl.BlockSpec((tm, f_out_p), lambda i: (i, 0)),
        compiler_params=pltpu.CompilerParams(
            dimension_semantics=("parallel",),
            vmem_limit_bytes=32 * 1024 * 1024),
    )(x, w, c_scale)


# --------------------------------------------------------------------------
# Kernel 2: out = relu?( d_in^-1/2 * (A @ XW) + b ), tiled reduction
#   - A tiles stream bf16 from HBM, XW is VMEM-resident (fetched once)
#   - bf16 x bf16 MXU, f32 accumulation
# --------------------------------------------------------------------------
def _agg_kernel(adj_ref, xw_ref, rscale_ref, b_ref, o_ref, acc_ref, *,
                tk, apply_relu):
    k = pl.program_id(1)

    @pl.when(k == 0)
    def _():
        acc_ref[...] = jnp.zeros_like(acc_ref)

    # XW is resident in VMEM; slice the k-th reduction panel out of it.
    xw_tile = xw_ref[pl.ds(pl.multiple_of(k * tk, tk), tk), :]
    acc_ref[...] += jnp.dot(adj_ref[...], xw_tile,
                            preferred_element_type=jnp.float32)

    @pl.when(k == pl.num_programs(1) - 1)
    def _():
        out = acc_ref[...] * rscale_ref[...] + b_ref[...]
        if apply_relu:
            out = jnp.maximum(out, 0.0)
        o_ref[...] = out.astype(o_ref.dtype)


def _aggregate(adj_bf16, xw_bf16, r_scale, b, *, tm, tk, apply_relu):
    n_p = adj_bf16.shape[0]
    f_out_p = xw_bf16.shape[1]
    kernel = functools.partial(_agg_kernel, tk=tk, apply_relu=apply_relu)
    cost = pl.CostEstimate(
        flops=2 * n_p * n_p * f_out_p,
        transcendentals=0,
        bytes_accessed=(n_p * n_p * 2          # adjacency stream (bf16)
                        + n_p * f_out_p * 2    # XW, fetched once (bf16)
                        + n_p * f_out_p * 4    # output (f32)
                        + n_p * 8 + f_out_p * 4))
    return pl.pallas_call(
        kernel,
        out_shape=jax.ShapeDtypeStruct((n_p, f_out_p), jnp.float32),
        grid=(n_p // tm, n_p // tk),
        in_specs=[
            # dominant HBM stream: bf16 adjacency tiles (default 2-deep pipeline)
            pl.BlockSpec((tm, tk), lambda i, k: (i, k)),
            # XW: full array, constant index_map -> DMA'd once, VMEM-resident
            pl.BlockSpec((n_p, f_out_p), lambda i, k: (0, 0)),
            pl.BlockSpec((tm, 1), lambda i, k: (i, 0)),
            pl.BlockSpec((1, f_out_p), lambda i, k: (0, 0)),
        ],
        out_specs=pl.BlockSpec((tm, f_out_p), lambda i, k: (i, 0)),
        scratch_shapes=[pltpu.VMEM((tm, f_out_p), jnp.float32)],
        compiler_params=pltpu.CompilerParams(
            dimension_semantics=("parallel", "arbitrary"),
            vmem_limit_bytes=32 * 1024 * 1024),
        cost_estimate=cost,
    )(adj_bf16, xw_bf16, r_scale, b)


def gcn_layer(adj_bf16, x, w, b, in_scale, out_scale, *, tm, tk, apply_relu):
    """One GraphConv layer on padded arrays: relu?(A_hat @ X @ W + b)."""
    xw = _xw_matmul(x, w, out_scale, tm=tm)     # bf16, out-degree folded in
    return _aggregate(adj_bf16, xw, in_scale, b, tm=tm, tk=tk,
                      apply_relu=apply_relu)


# --------------------------------------------------------------------------
# Wrapper: normalization prep, lane/tile padding, 3 layers
# --------------------------------------------------------------------------
def simplified_gcn_forward(adj, features, params, *, tm=512, tk=512):
    lane = 128
    n = adj.shape[0]
    n_p = _round_up(n, lane)
    # Adaptive tiles: keep >= 2 dst tiles when possible (v7x dual-TC sharding
    # of the 'parallel' axis); reduction tile as large as divides n_p.
    tm = _pick_tile(n_p, tm, min_tiles=2)
    tk = _pick_tile(n_p, tk, min_tiles=1)

    # Degrees from the original (unpadded, un-copied) adjacency.  DGL 'both'
    # normalization with degree clamp(min=1); padded rows get scale 1.0
    # (harmless: padded adjacency rows/cols are zero, rows sliced off later).
    adj_f32 = adj.astype(jnp.float32)
    out_scale = jnp.maximum(adj_f32.sum(axis=0), 1.0) ** -0.5   # per source
    in_scale = jnp.maximum(adj_f32.sum(axis=1), 1.0) ** -0.5    # per destination
    out_scale = jnp.pad(out_scale, (0, n_p - n),
                        constant_values=1.0).reshape(n_p, 1)
    in_scale = jnp.pad(in_scale, (0, n_p - n),
                       constant_values=1.0).reshape(n_p, 1)

    # Only the narrow bf16 copy of A is padded / kept live (0/1 exact in bf16).
    adj_bf16 = jnp.pad(adj.astype(jnp.bfloat16), ((0, n_p - n), (0, n_p - n)))

    f_in = features.shape[1]
    x = jnp.pad(features.astype(jnp.float32),
                ((0, n_p - n), (0, _round_up(f_in, lane) - f_in)))

    for w_name, b_name, relu in (("w1", "b1", True),
                                 ("w2", "b2", True),
                                 ("w3", "b3", False)):
        w = params[w_name]
        b = params[b_name]
        fi, fo = w.shape
        fi_p, fo_p = _round_up(fi, lane), _round_up(fo, lane)
        w_p = jnp.pad(w.astype(jnp.float32), ((0, fi_p - fi), (0, fo_p - fo)))
        b_p = jnp.pad(b.astype(jnp.float32), (0, fo_p - fo)).reshape(1, fo_p)
        x = gcn_layer(adj_bf16, x, w_p, b_p, in_scale, out_scale,
                      tm=tm, tk=tk, apply_relu=relu)

    return x[:n, :params["w3"].shape[1]]


# --------------------------------------------------------------------------
# Deterministic demo inputs / init
# --------------------------------------------------------------------------
def init_params(key, in_features, hidden_features, out_features):
    """Xavier-uniform weights, zero biases (DGL GraphConv default init)."""
    dims = [
        (in_features, hidden_features),
        (hidden_features, hidden_features * 2),
        (hidden_features * 2, out_features),
    ]
    params = {}
    keys = jax.random.split(key, len(dims))
    for i, ((fi, fo), k) in enumerate(zip(dims, keys), start=1):
        limit = (6.0 / (fi + fo)) ** 0.5
        params[f"w{i}"] = jax.random.uniform(
            k, (fi, fo), dtype=jnp.float32, minval=-limit, maxval=limit)
        params[f"b{i}"] = jnp.zeros((fo,), dtype=jnp.float32)
    return params


def make_graph(key, num_nodes, avg_degree=3):
    """Deterministic small random digraph (dense adjacency, [dst, src])."""
    p = avg_degree / num_nodes
    adj = jax.random.uniform(key, (num_nodes, num_nodes)) < p
    adj = jnp.logical_or(adj, jnp.eye(num_nodes, dtype=bool))   # self loops
    return adj.astype(jnp.float32)


if __name__ == "__main__":
    num_nodes = 300          # pads to 384 -> 3 parallel dst tiles at tm=128
    in_features = 8
    hidden_features = 16
    out_features = 8

    root = jax.random.PRNGKey(0)
    k_graph, k_feat, k_param = jax.random.split(root, 3)

    adj = make_graph(k_graph, num_nodes)
    features = jax.random.normal(k_feat, (num_nodes, in_features),
                                 dtype=jnp.float32)
    params = init_params(k_param, in_features, hidden_features, out_features)

    fwd = jax.jit(functools.partial(simplified_gcn_forward, tm=512, tk=512))
    out = jax.block_until_ready(fwd(adj, features, params))
    assert out.shape == (num_nodes, out_features)

    # Pure-JAX reference (high-precision dots) for the full forward pass.
    hp = jax.lax.Precision.HIGHEST
    dot = lambda a, b: jnp.dot(a, b, precision=hp)
    adj_f = adj.astype(jnp.float32)
    o_deg = jnp.maximum(adj_f.sum(axis=0), 1.0)
    i_deg = jnp.maximum(adj_f.sum(axis=1), 1.0)
    a_hat = (i_deg ** -0.5)[:, None] * adj_f * (o_deg ** -0.5)[None, :]
    ref = jnp.maximum(dot(a_hat, dot(features, params["w1"])) + params["b1"], 0.0)
    ref = jnp.maximum(dot(a_hat, dot(ref, params["w2"])) + params["b2"], 0.0)
    ref = dot(a_hat, dot(ref, params["w3"])) + params["b3"]
    # bf16 XW operands introduce ~0.2-0.4% relative error per layer; f32
    # accumulation and exact 0/1 adjacency keep it well inside 2e-2.
    assert jnp.allclose(out, ref, atol=2e-2, rtol=2e-2), (
        float(jnp.max(jnp.abs(out - ref))))

    print("KERNEL_OK")
</pallas_src>

<mosaic_0001>
module attributes {stable_mosaic.version = 11 : i64} {
  func.func @_xw_kernel(%arg0: i32, %arg1: memref<128x128xf32, #tpu.memory_space<vmem>>, %arg2: memref<128x128xf32, #tpu.memory_space<vmem>>, %arg3: memref<128x1xf32, #tpu.memory_space<vmem>>, %arg4: memref<128x128xbf16, #tpu.memory_space<vmem>>) attributes {dimension_semantics = [#tpu.dimension_semantics<parallel>], iteration_bounds = array<i64: 3>, scalar_prefetch = 0 : i64, scratch_operands = 0 : i64, tpu.core_type = #tpu.core_type<tc>, window_params = [{transform_indices = @transform_0, window_bounds = array<i64: 128, 128>}, {pipeline_mode = #tpu.pipeline_mode<synchronous>, transform_indices = @transform_1, window_bounds = array<i64: 128, 128>}, {transform_indices = @transform_2, window_bounds = array<i64: 128, 1>}, {transform_indices = @transform_3, window_bounds = array<i64: 128, 128>}]} {
    %c0 = arith.constant 0 : index
    %c0_0 = arith.constant 0 : index
    %0 = vector.load %arg1[%c0, %c0_0] : memref<128x128xf32, #tpu.memory_space<vmem>>, vector<128x128xf32>
    %c0_1 = arith.constant 0 : index
    %c0_2 = arith.constant 0 : index
    %1 = vector.load %arg2[%c0_1, %c0_2] : memref<128x128xf32, #tpu.memory_space<vmem>>, vector<128x128xf32>
    %cst = arith.constant dense<0.000000e+00> : vector<128x128xf32>
    %2 = tpu.matmul %0, %1, %cst {dimension_numbers = #tpu.dot_dimension_numbers<[1], [0], [0], [1], [0, 0, 1, 1], [], []>} : vector<128x128xf32>, vector<128x128xf32>, vector<128x128xf32> -> vector<128x128xf32>
    %c0_3 = arith.constant 0 : index
    %c0_4 = arith.constant 0 : index
    %3 = vector.load %arg3[%c0_3, %c0_4] : memref<128x1xf32, #tpu.memory_space<vmem>>, vector<128x1xf32>
    %4 = vector.broadcast %3 : vector<128x1xf32> to vector<128x128xf32>
    %5 = arith.mulf %2, %4 : vector<128x128xf32>
    %6 = arith.truncf %5 : vector<128x128xf32> to vector<128x128xbf16>
    %c0_5 = arith.constant 0 : index
    %c0_6 = arith.constant 0 : index
    %7 = vector.load %arg4[%c0_5, %c0_6] : memref<128x128xbf16, #tpu.memory_space<vmem>>, vector<128x128xbf16>
    tpu.vector_store %arg4[%c0_5, %c0_6], %6 {strides = array<i32>} : memref<128x128xbf16, #tpu.memory_space<vmem>>, vector<128x128xbf16>,
    return
  }
  func.func @transform_0(%arg0: i32) -> (i32, i32) {
    %c0_i32 = arith.constant 0 : i32
    %c0_i32_0 = arith.constant 0 : i32
    return %arg0, %c0_i32 : i32, i32
  }
  func.func @transform_1(%arg0: i32) -> (i32, i32) {
    %c0_i32 = arith.constant 0 : i32
    %c0_i32_0 = arith.constant 0 : i32
    %c0_i32_1 = arith.constant 0 : i32
    return %c0_i32, %c0_i32_0 : i32, i32
  }
  func.func @transform_2(%arg0: i32) -> (i32, i32) {
    %c0_i32 = arith.constant 0 : i32
    %c0_i32_0 = arith.constant 0 : i32
    return %arg0, %c0_i32 : i32, i32
  }
  func.func @transform_3(%arg0: i32) -> (i32, i32) {
    %c0_i32 = arith.constant 0 : i32
    %c0_i32_0 = arith.constant 0 : i32
    return %arg0, %c0_i32 : i32, i32
  }
}

module attributes {stable_mosaic.version = 11 : i64} {
  func.func @_agg_kernel(%arg0: i32, %arg1: i32, %arg2: memref<128x384xbf16, #tpu.memory_space<vmem>>, %arg3: memref<384x128xbf16, #tpu.memory_space<vmem>>, %arg4: memref<128x1xf32, #tpu.memory_space<vmem>>, %arg5: memref<1x128xf32, #tpu.memory_space<vmem>>, %arg6: memref<128x128xf32, #tpu.memory_space<vmem>>, %arg7: memref<128x128xf32, #tpu.memory_space<vmem>>) attributes {dimension_semantics = [#tpu.dimension_semantics<parallel>, #tpu.dimension_semantics<arbitrary>], iteration_bounds = array<i64: 3, 1>, scalar_prefetch = 0 : i64, scratch_operands = 1 : i64, tpu.core_type = #tpu.core_type<tc>, window_params = [{transform_indices = @transform_0, window_bounds = array<i64: 128, 384>}, {pipeline_mode = #tpu.pipeline_mode<synchronous>, transform_indices = @transform_1, window_bounds = array<i64: 384, 128>}, {transform_indices = @transform_2, window_bounds = array<i64: 128, 1>}, {pipeline_mode = #tpu.pipeline_mode<synchronous>, transform_indices = @transform_3, window_bounds = array<i64: 1, 128>}, {transform_indices = @transform_4, window_bounds = array<i64: 128, 128>}]} {
    %c0_i32 = arith.constant 0 : i32
    %0 = arith.cmpi eq, %arg1, %c0_i32 : i32
    %1 = arith.extui %0 : i1 to i32
    %c0_i32_0 = arith.constant 0 : i32
    %2 = arith.cmpi ne, %1, %c0_i32_0 : i32
    scf.if %2 {
      %cst_9 = arith.constant 0.000000e+00 : f32
      %15 = vector.broadcast %cst_9 : f32 to vector<128x128xf32>
      %c0_10 = arith.constant 0 : index
      %c0_11 = arith.constant 0 : index
      %16 = vector.load %arg7[%c0_10, %c0_11] : memref<128x128xf32, #tpu.memory_space<vmem>>, vector<128x128xf32>
      tpu.vector_store %arg7[%c0_10, %c0_11], %15 {strides = array<i32>} : memref<128x128xf32, #tpu.memory_space<vmem>>, vector<128x128xf32>,
    } else {
    }
    %c384_i32 = arith.constant 384 : i32
    %3 = arith.muli %arg1, %c384_i32 : i32
    %4 = tpu.assume_multiple %3, 384 : i32
    %5 = arith.index_cast %4 : i32 to index
    %c0 = arith.constant 0 : index
    %6 = vector.load %arg3[%5, %c0] : memref<384x128xbf16, #tpu.memory_space<vmem>>, vector<384x128xbf16>
    %c0_1 = arith.constant 0 : index
    %c0_2 = arith.constant 0 : index
    %7 = vector.load %arg7[%c0_1, %c0_2] : memref<128x128xf32, #tpu.memory_space<vmem>>, vector<128x128xf32>
    %c0_3 = arith.constant 0 : index
    %c0_4 = arith.constant 0 : index
    %8 = vector.load %arg2[%c0_3, %c0_4] : memref<128x384xbf16, #tpu.memory_space<vmem>>, vector<128x384xbf16>
    %cst = arith.constant dense<0.000000e+00> : vector<128x128xf32>
    %9 = tpu.matmul %8, %6, %cst {dimension_numbers = #tpu.dot_dimension_numbers<[1], [0], [0], [1], [0, 0, 1, 1], [], []>} : vector<128x384xbf16>, vector<384x128xbf16>, vector<128x128xf32> -> vector<128x128xf32>
    %10 = arith.addf %7, %9 : vector<128x128xf32>
    %c0_5 = arith.constant 0 : index
    %c0_6 = arith.constant 0 : index
    %11 = vector.load %arg7[%c0_5, %c0_6] : memref<128x128xf32, #tpu.memory_space<vmem>>, vector<128x128xf32>
    tpu.vector_store %arg7[%c0_5, %c0_6], %10 {strides = array<i32>} : memref<128x128xf32, #tpu.memory_space<vmem>>, vector<128x128xf32>,
    %c0_i32_7 = arith.constant 0 : i32
    %12 = arith.cmpi eq, %arg1, %c0_i32_7 : i32
    %13 = arith.extui %12 : i1 to i32
    %c0_i32_8 = arith.constant 0 : i32
    %14 = arith.cmpi ne, %13, %c0_i32_8 : i32
    scf.if %14 {
      %c0_9 = arith.constant 0 : index
      %c0_10 = arith.constant 0 : index
      %15 = vector.load %arg7[%c0_9, %c0_10] : memref<128x128xf32, #tpu.memory_space<vmem>>, vector<128x128xf32>
      %c0_11 = arith.constant 0 : index
      %c0_12 = arith.constant 0 : index
      %16 = vector.load %arg4[%c0_11, %c0_12] : memref<128x1xf32, #tpu.memory_space<vmem>>, vector<128x1xf32>
      %17 = vector.broadcast %16 : vector<128x1xf32> to vector<128x128xf32>
      %18 = arith.mulf %15, %17 : vector<128x128xf32>
      %c0_13 = arith.constant 0 : index
      %c0_14 = arith.constant 0 : index
      %19 = vector.load %arg5[%c0_13, %c0_14] : memref<1x128xf32, #tpu.memory_space<vmem>>, vector<1x128xf32>
      %20 = vector.broadcast %19 : vector<1x128xf32> to vector<128x128xf32>
      %21 = arith.addf %18, %20 : vector<128x128xf32>
      %cst_15 = arith.constant 0.000000e+00 : f32
      %22 = vector.broadcast %cst_15 : f32 to vector<128x128xf32>
      %23 = arith.maximumf %21, %22 : vector<128x128xf32>
      %c0_16 = arith.constant 0 : index
      %c0_17 = arith.constant 0 : index
      %24 = vector.load %arg6[%c0_16, %c0_17] : memref<128x128xf32, #tpu.memory_space<vmem>>, vector<128x128xf32>
      tpu.vector_store %arg6[%c0_16, %c0_17], %23 {strides = array<i32>} : memref<128x128xf32, #tpu.memory_space<vmem>>, vector<128x128xf32>,
    } else {
    }
    return
  }
  func.func @transform_0(%arg0: i32, %arg1: i32) -> (i32, i32) {
    %c0_i32 = arith.constant 0 : i32
    return %arg0, %arg1 : i32, i32
  }
  func.func @transform_1(%arg0: i32, %arg1: i32) -> (i32, i32) {
    %c0_i32 = arith.constant 0 : i32
    %c0_i32_0 = arith.constant 0 : i32
    %c0_i32_1 = arith.constant 0 : i32
    return %c0_i32, %c0_i32_0 : i32, i32
  }
  func.func @transform_2(%arg0: i32, %arg1: i32) -> (i32, i32) {
    %c0_i32 = arith.constant 0 : i32
    %c0_i32_0 = arith.constant 0 : i32
    return %arg0, %c0_i32 : i32, i32
  }
  func.func @transform_3(%arg0: i32, %arg1: i32) -> (i32, i32) {
    %c0_i32 = arith.constant 0 : i32
    %c0_i32_0 = arith.constant 0 : i32
    %c0_i32_1 = arith.constant 0 : i32
    return %c0_i32, %c0_i32_0 : i32, i32
  }
  func.func @transform_4(%arg0: i32, %arg1: i32) -> (i32, i32) {
    %c0_i32 = arith.constant 0 : i32
    %c0_i32_0 = arith.constant 0 : i32
    return %arg0, %c0_i32 : i32, i32
  }
}

module attributes {stable_mosaic.version = 11 : i64} {
  func.func @_agg_kernel(%arg0: i32, %arg1: i32, %arg2: memref<128x384xbf16, #tpu.memory_space<vmem>>, %arg3: memref<384x128xbf16, #tpu.memory_space<vmem>>, %arg4: memref<128x1xf32, #tpu.memory_space<vmem>>, %arg5: memref<1x128xf32, #tpu.memory_space<vmem>>, %arg6: memref<128x128xf32, #tpu.memory_space<vmem>>, %arg7: memref<128x128xf32, #tpu.memory_space<vmem>>) attributes {dimension_semantics = [#tpu.dimension_semantics<parallel>, #tpu.dimension_semantics<arbitrary>], iteration_bounds = array<i64: 3, 1>, scalar_prefetch = 0 : i64, scratch_operands = 1 : i64, tpu.core_type = #tpu.core_type<tc>, window_params = [{transform_indices = @transform_0, window_bounds = array<i64: 128, 384>}, {pipeline_mode = #tpu.pipeline_mode<synchronous>, transform_indices = @transform_1, window_bounds = array<i64: 384, 128>}, {transform_indices = @transform_2, window_bounds = array<i64: 128, 1>}, {pipeline_mode = #tpu.pipeline_mode<synchronous>, transform_indices = @transform_3, window_bounds = array<i64: 1, 128>}, {transform_indices = @transform_4, window_bounds = array<i64: 128, 128>}]} {
    %c0_i32 = arith.constant 0 : i32
    %0 = arith.cmpi eq, %arg1, %c0_i32 : i32
    %1 = arith.extui %0 : i1 to i32
    %c0_i32_0 = arith.constant 0 : i32
    %2 = arith.cmpi ne, %1, %c0_i32_0 : i32
    scf.if %2 {
      %cst_9 = arith.constant 0.000000e+00 : f32
      %15 = vector.broadcast %cst_9 : f32 to vector<128x128xf32>
      %c0_10 = arith.constant 0 : index
      %c0_11 = arith.constant 0 : index
      %16 = vector.load %arg7[%c0_10, %c0_11] : memref<128x128xf32, #tpu.memory_space<vmem>>, vector<128x128xf32>
      tpu.vector_store %arg7[%c0_10, %c0_11], %15 {strides = array<i32>} : memref<128x128xf32, #tpu.memory_space<vmem>>, vector<128x128xf32>,
    } else {
    }
    %c384_i32 = arith.constant 384 : i32
    %3 = arith.muli %arg1, %c384_i32 : i32
    %4 = tpu.assume_multiple %3, 384 : i32
    %5 = arith.index_cast %4 : i32 to index
    %c0 = arith.constant 0 : index
    %6 = vector.load %arg3[%5, %c0] : memref<384x128xbf16, #tpu.memory_space<vmem>>, vector<384x128xbf16>
    %c0_1 = arith.constant 0 : index
    %c0_2 = arith.constant 0 : index
    %7 = vector.load %arg7[%c0_1, %c0_2] : memref<128x128xf32, #tpu.memory_space<vmem>>, vector<128x128xf32>
    %c0_3 = arith.constant 0 : index
    %c0_4 = arith.constant 0 : index
    %8 = vector.load %arg2[%c0_3, %c0_4] : memref<128x384xbf16, #tpu.memory_space<vmem>>, vector<128x384xbf16>
    %cst = arith.constant dense<0.000000e+00> : vector<128x128xf32>
    %9 = tpu.matmul %8, %6, %cst {dimension_numbers = #tpu.dot_dimension_numbers<[1], [0], [0], [1], [0, 0, 1, 1], [], []>} : vector<128x384xbf16>, vector<384x128xbf16>, vector<128x128xf32> -> vector<128x128xf32>
    %10 = arith.addf %7, %9 : vector<128x128xf32>
    %c0_5 = arith.constant 0 : index
    %c0_6 = arith.constant 0 : index
    %11 = vector.load %arg7[%c0_5, %c0_6] : memref<128x128xf32, #tpu.memory_space<vmem>>, vector<128x128xf32>
    tpu.vector_store %arg7[%c0_5, %c0_6], %10 {strides = array<i32>} : memref<128x128xf32, #tpu.memory_space<vmem>>, vector<128x128xf32>,
    %c0_i32_7 = arith.constant 0 : i32
    %12 = arith.cmpi eq, %arg1, %c0_i32_7 : i32
    %13 = arith.extui %12 : i1 to i32
    %c0_i32_8 = arith.constant 0 : i32
    %14 = arith.cmpi ne, %13, %c0_i32_8 : i32
    scf.if %14 {
      %c0_9 = arith.constant 0 : index
      %c0_10 = arith.constant 0 : index
      %15 = vector.load %arg7[%c0_9, %c0_10] : memref<128x128xf32, #tpu.memory_space<vmem>>, vector<128x128xf32>
      %c0_11 = arith.constant 0 : index
      %c0_12 = arith.constant 0 : index
      %16 = vector.load %arg4[%c0_11, %c0_12] : memref<128x1xf32, #tpu.memory_space<vmem>>, vector<128x1xf32>
      %17 = vector.broadcast %16 : vector<128x1xf32> to vector<128x128xf32>
      %18 = arith.mulf %15, %17 : vector<128x128xf32>
      %c0_13 = arith.constant 0 : index
      %c0_14 = arith.constant 0 : index
      %19 = vector.load %arg5[%c0_13, %c0_14] : memref<1x128xf32, #tpu.memory_space<vmem>>, vector<1x128xf32>
      %20 = vector.broadcast %19 : vector<1x128xf32> to vector<128x128xf32>
      %21 = arith.addf %18, %20 : vector<128x128xf32>
      %c0_15 = arith.constant 0 : index
      %c0_16 = arith.constant 0 : index
      %22 = vector.load %arg6[%c0_15, %c0_16] : memref<128x128xf32, #tpu.memory_space<vmem>>, vector<128x128xf32>
      tpu.vector_store %arg6[%c0_15, %c0_16], %21 {strides = array<i32>} : memref<128x128xf32, #tpu.memory_space<vmem>>, vector<128x128xf32>,
    } else {
    }
    return
  }
  func.func @transform_0(%arg0: i32, %arg1: i32) -> (i32, i32) {
    %c0_i32 = arith.constant 0 : i32
    return %arg0, %arg1 : i32, i32
  }
  func.func @transform_1(%arg0: i32, %arg1: i32) -> (i32, i32) {
    %c0_i32 = arith.constant 0 : i32
    %c0_i32_0 = arith.constant 0 : i32
    %c0_i32_1 = arith.constant 0 : i32
    return %c0_i32, %c0_i32_0 : i32, i32
  }
  func.func @transform_2(%arg0: i32, %arg1: i32) -> (i32, i32) {
    %c0_i32 = arith.constant 0 : i32
    %c0_i32_0 = arith.constant 0 : i32
    return %arg0, %c0_i32 : i32, i32
  }
  func.func @transform_3(%arg0: i32, %arg1: i32) -> (i32, i32) {
    %c0_i32 = arith.constant 0 : i32
    %c0_i32_0 = arith.constant 0 : i32
    %c0_i32_1 = arith.constant 0 : i32
    return %c0_i32, %c0_i32_0 : i32, i32
  }
  func.func @transform_4(%arg0: i32, %arg1: i32) -> (i32, i32) {
    %c0_i32 = arith.constant 0 : i32
    %c0_i32_0 = arith.constant 0 : i32
    return %arg0, %c0_i32 : i32, i32
  }
}

</mosaic_0001>

<bundles_post_ra>
// kernel: simplified_gcn_forward.6
= control target key start
LH: loop header
LB: loop body
LE: loop exit
PB: predicated region body
PF: predicated region fallthrough
CT: control target
= control target key end

     0   :  { %s901_s12 = smov 0   ;;  %s1019_s0 = inlined_call_operand.vmem [shape: f32[384,128], index: 0, kind: input, shape index: {}]   ;;  %s1020_s1 = inlined_call_operand.vmem [shape: f32[128,128], index: 1, kind: input, shape index: {}]   ;;  %s1021_s2 = inlined_call_operand.vmem [shape: f32[384,1], index: 2, kind: input, shape index: {}]   ;;  %s1022_s3 = inlined_call_operand.vmem [shape: bf16[384,128], index: 3, kind: output, shape index: {}]  }
   0x1 LB: > { %s633_s13 = sadd.s32 4294967295, %s878_s12   ;;  %p637_p0 = scmp.ge.s32.totalorder %s878_s12, 1  ;;  %s878_s12 = sphi %s901_s12, %s13_s12  }
   0x2   : > { %p149_p1 = scmp.lt.s32.totalorder %s878_s12, 4 }
   0x4   : > { %p150_p2 = pnand %p637_p0, %p149_p1 }
   0x5   : > { %v212_v0 = vld [vmem:[%s1020_s1] sm:$0xff] (!%p150_p2)  ;;  %v213_v1 = vld [vmem:[%s1020_s1 + $0x8] sm:$0xff] (!%p150_p2)  ;;  %v214_v2 = vld [vmem:[%s1020_s1 + $0x10] sm:$0xff] (!%p150_p2)  ;;  %s638_s20 = sshll.u32 (!%p150_p2), %s633_s13, 4  ;;  %v880_v5 = vmov (!%p150_p2), 0  }
   0x6   : > { %153 = sbr.rel (%p150_p2) target bundleno = 271 (0x10f), region = 32  ;;  %v813_v3 = vpack.c.bf16 (!%p150_p2), %v213_v1, %v212_v0  ;;  %v215_v4 = vld [vmem:[%s1020_s1 + $0x18] sm:$0xff] (!%p150_p2)  ;;  %p179_p3 = scmp.lt.s32.totalorder (!%p150_p2), %s638_s20, 47  ;;  %871 = vset.pattern.permute.xlu1 (!%p150_p2), %v880_v5  ;;  %870 = vset.pattern.permute.xlu0 (!%p150_p2), %v880_v5  ;;  %v216_v7 = vld [vmem:[%s1020_s1 + $0x20] sm:$0xff] (!%p150_p2)  ;;  %v217_v8 = vld [vmem:[%s1020_s1 + $0x28] sm:$0xff] (!%p150_p2) }
   0x7   : > { %v817_v6 = vpack.c.bf16 (!%p150_p2), %v215_v4, %v214_v2  ;;  %v821_v9 = vpack.c.bf16 (!%p150_p2), %v217_v8, %v216_v7  ;;  %v218_v10 = vld [vmem:[%s1020_s1 + $0x30] sm:$0xff] (!%p150_p2)  ;;  %v219_v11 = vld [vmem:[%s1020_s1 + $0x38] sm:$0xff] (!%p150_p2)  ;;  %v220_v15 = vld [vmem:[%s1020_s1 + $0x40] sm:$0xff] (!%p150_p2) }
   0x8   : > { %814 = vmatprep.subr.bf16.mxu0 (!%p150_p2), %v813_v3  ;;  %845 = vmatprep.subr.bf16.mxu1 (!%p150_p2), %v813_v3  ;;  %v825_v14 = vpack.c.bf16 (!%p150_p2), %v219_v11, %v218_v10  ;;  %v221_v16 = vld [vmem:[%s1020_s1 + $0x48] sm:$0xff] (!%p150_p2)  ;;  %v222_v20 = vld [vmem:[%s1020_s1 + $0x50] sm:$0xff] (!%p150_p2)  ;;  %v223_v21 = vld [vmem:[%s1020_s1 + $0x58] sm:$0xff] (!%p150_p2) }
   0x9   : > { %816 = vmatpush3.bf16.msra.mxu0 (!%p150_p2), %v813_v3  ;;  %853 = vmatpush3.bf16.msra.mxu1 (!%p150_p2), %v813_v3  ;;  %v829_v19 = vpack.c.bf16 (!%p150_p2), %v221_v16, %v220_v15  ;;  %v833_v24 = vpack.c.bf16 (!%p150_p2), %v223_v21, %v222_v20  ;;  %v224_v25 = vld [vmem:[%s1020_s1 + $0x60] sm:$0xff] (!%p150_p2)  ;;  %v225_v26 = vld [vmem:[%s1020_s1 + $0x68] sm:$0xff] (!%p150_p2)  ;;  %v226_v30 = vld [vmem:[%s1020_s1 + $0x70] sm:$0xff] (!%p150_p2) }
   0xa   : > { %818 = vmatprep.subr.bf16.mxu0 (!%p150_p2), %v817_v6  ;;  %846 = vmatprep.subr.bf16.mxu1 (!%p150_p2), %v817_v6  ;;  %v837_v29 = vpack.c.bf16 (!%p150_p2), %v225_v26, %v224_v25  ;;  %v227_v31 = vld [vmem:[%s1020_s1 + $0x78] sm:$0xff] (!%p150_p2) }
   0xb   : > { %v841_v34 = vpack.c.bf16 (!%p150_p2), %v227_v31, %v226_v30 }
   0xd   : > { %s1024_s20 = smov (!%p179_p3, %s638_s20), 47  ;;  %820 = vmatpush3.bf16.msra.mxu0 %v817_v6  ;;  %854 = vmatpush3.bf16.msra.mxu1 %v817_v6 }
   0xe   : > { %s639_s27 = sshll.u32 %s1024_s20, 3  ;;  %822 = vmatprep.subr.bf16.mxu0 %v821_v9  ;;  %847 = vmatprep.subr.bf16.mxu1 %v821_v9  ;;  %s643_s29 = sshll.u32 %s1024_s20, 2 }
   0xf   : > { %s939_s7 = scalar_lea.vmem %s1019_s0, %s639_s27  ;;  %s946_s10 = scalar_lea.vmem %s1021_s2, %s639_s27 }
  0x10   : > { %v196_v12 = vld [vmem:[%s939_s7] sm:$0xff]  ;;  %v375_v17 = vld [vmem:[%s946_s10 + $0x10] sm:$0xff]  ;;  %v376_v22 = vld [vmem:[%s946_s10 + $0x18] sm:$0xff]  ;;  %s1006_s5 = scalar_lea.vmem %s1022_s3, %s643_s29 }
  0x11   : > { %v204_v13 = vld [vmem:[%s939_s7 + $0x40] sm:$0xff]  ;;  %789 = vmatprep.mubr.f32.mxu0 %v196_v12  ;;  %824 = vmatpush3.bf16.msra.mxu0 %v821_v9  ;;  %v374_v23 = vld [vmem:[%s946_s10 + $0x8] sm:$0xff]  ;;  %v380_v32 = vld [vmem:[%s946_s10 + $0x38] sm:$0xff] }
  0x12   : > { %801 = vmatprep.mubr.f32.mxu1 %v204_v13  ;;  %855 = vmatpush3.bf16.msra.mxu1 %v821_v9  ;;  %v373_v18 = vld [vmem:[%s946_s10] sm:$0xff]  ;;  %v378_v27 = vld [vmem:[%s946_s10 + $0x28] sm:$0xff]  ;;  %v379_v33 = vld [vmem:[%s946_s10 + $0x30] sm:$0xff] }
  0x13   : > { %826 = vmatprep.subr.bf16.mxu0 %v825_v14  ;;  %848 = vmatprep.subr.bf16.mxu1 %v825_v14  ;;  %v377_v28 = vld [vmem:[%s946_s10 + $0x20] sm:$0xff]  ;;  %v382_v35 = vld [vmem:[%s946_s10 + $0x48] sm:$0xff]  ;;  %v384_v37 = vld [vmem:[%s946_s10 + $0x58] sm:$0xff] }
  0x14   : > { %401 = vperm.xlu1 %871, %v375_v17   ;;  %391 = vperm.xlu0 %870, %v373_v18   ;;  %v381_v36 = vld [vmem:[%s946_s10 + $0x40] sm:$0xff]  ;;  %v383_v38 = vld [vmem:[%s946_s10 + $0x50] sm:$0xff]  ;;  %v197_v39 = vld [vmem:[%s939_s7 + $0x8] sm:$0xff] }
  0x15   : > { %828 = vmatpush3.bf16.msra.mxu0 %v825_v14  ;;  %v205_v40 = vld [vmem:[%s939_s7 + $0x48] sm:$0xff]  ;;  %v198_v41 = vld [vmem:[%s939_s7 + $0x10] sm:$0xff]  ;;  %v385_v44 = vld [vmem:[%s946_s10 + $0x60] sm:$0xff] }
  0x16   : > { %856 = vmatpush3.bf16.msra.mxu1 %v825_v14  ;;  %830 = vmatprep.subr.bf16.mxu0 %v829_v19  ;;  %v206_v42 = vld [vmem:[%s939_s7 + $0x50] sm:$0xff]  ;;  %v386_v43 = vld [vmem:[%s946_s10 + $0x68] sm:$0xff]  ;;  %v199_v45 = vld [vmem:[%s939_s7 + $0x18] sm:$0xff] }
  0x17   : > { %849 = vmatprep.subr.bf16.mxu1 %v829_v19  ;;  %v207_v46 = vld [vmem:[%s939_s7 + $0x58] sm:$0xff]  ;;  %v200_v47 = vld [vmem:[%s939_s7 + $0x20] sm:$0xff]  ;;  %v387_v50 = vld [vmem:[%s946_s10 + $0x70] sm:$0xff] }
  0x18   : > { %406 = vperm.xlu1 %871, %v376_v22   ;;  %396 = vperm.xlu0 %870, %v374_v23   ;;  %v208_v48 = vld [vmem:[%s939_s7 + $0x60] sm:$0xff]  ;;  %v388_v49 = vld [vmem:[%s946_s10 + $0x78] sm:$0xff]  ;;  %v201_v51 = vld [vmem:[%s939_s7 + $0x28] sm:$0xff] }
  0x19   : > { %832 = vmatpush3.bf16.msra.mxu0 %v829_v19  ;;  %v209_v52 = vld [vmem:[%s939_s7 + $0x68] sm:$0xff]  ;;  %v202_v53 = vld [vmem:[%s939_s7 + $0x30] sm:$0xff]  ;;  %v203_v55 = vld [vmem:[%s939_s7 + $0x38] sm:$0xff] }
  0x1a   : > { %857 = vmatpush3.bf16.msra.mxu1 %v829_v19  ;;  %834 = vmatprep.subr.bf16.mxu0 %v833_v24  ;;  %v210_v54 = vld [vmem:[%s939_s7 + $0x70] sm:$0xff]  ;;  %v211_v56 = vld [vmem:[%s939_s7 + $0x78] sm:$0xff] }
  0x1b   : > { %850 = vmatprep.subr.bf16.mxu1 %v833_v24 }
  0x1c   : > { %416 = vperm.xlu1 %871, %v378_v27   ;;  %411 = vperm.xlu0 %870, %v377_v28  }
  0x1d   : > { %836 = vmatpush3.bf16.msra.mxu0 %v833_v24 }
  0x1e   : > { %858 = vmatpush3.bf16.msra.mxu1 %v833_v24  ;;  %838 = vmatprep.subr.bf16.mxu0 %v837_v29 }
  0x1f   : > { %851 = vmatprep.subr.bf16.mxu1 %v837_v29 }
  0x20   : > { %426 = vperm.xlu1 %871, %v380_v32   ;;  %421 = vperm.xlu0 %870, %v379_v33  }
  0x21   : > { %840 = vmatpush3.bf16.msra.mxu0 %v837_v29 }
  0x22   : > { %859 = vmatpush3.bf16.msra.mxu1 %v837_v29  ;;  %842 = vmatprep.subr.bf16.mxu0 %v841_v34 }
  0x23   : > { %852 = vmatprep.subr.bf16.mxu1 %v841_v34 }
  0x24   : > { %436 = vperm.xlu1 %871, %v382_v35   ;;  %431 = vperm.xlu0 %870, %v381_v36  }
  0x25   : > { %844 = vmatpush3.bf16.msra.mxu0 %v841_v34 }
  0x26   : > { %860 = vmatpush3.bf16.msra.mxu1 %v841_v34 }
  0x28   : > { %446 = vperm.xlu1 %871, %v384_v37   ;;  %441 = vperm.xlu0 %870, %v383_v38  }
  0x29   : > { %790 = vmatmul.mubr.f32.vlgmr.msra.gmra.mrb[0].mxu0 %v197_v39  ;;  %802 = vmatmul.mubr.f32.vlgmr.msra.gmra.mrb[0].mxu1 %v205_v40 }
  0x2a   : > { %792 = vmatprep.mubr.f32.mxu0 %v198_v41  ;;  %804 = vmatprep.mubr.f32.mxu1 %v206_v42 }
  0x2c   : > { %456 = vperm.xlu1 %871, %v386_v43   ;;  %451 = vperm.xlu0 %870, %v385_v44  }
  0x2d   : > { %793 = vmatmul.mubr.f32.gmra.mrb[2].mxu0 %v199_v45  ;;  %805 = vmatmul.mubr.f32.gmra.mrb[2].mxu1 %v207_v46 }
  0x2e   : > { %795 = vmatprep.mubr.f32.mxu0 %v200_v47  ;;  %807 = vmatprep.mubr.f32.mxu1 %v208_v48 }
  0x30   : > { %466 = vperm.xlu1 %871, %v388_v49   ;;  %461 = vperm.xlu0 %870, %v387_v50  }
  0x31   : > { %796 = vmatmul.mubr.f32.gmra.mrb[4].mxu0 %v201_v51  ;;  %808 = vmatmul.mubr.f32.gmra.mrb[4].mxu1 %v209_v52 }
  0x32   : > { %798 = vmatprep.mubr.f32.mxu0 %v202_v53  ;;  %810 = vmatprep.mubr.f32.mxu1 %v210_v54 }
  0x35   : > { %799 = vmatmul.mubr.f32.gmra.mrb[6].mxu0 %v203_v55  ;;  %811 = vmatmul.mubr.f32.gmra.mrb[6].mxu1 %v211_v56 }
  0x93   : > { %v402_v57 = vpop.permute.xlu1 %401  ;;  %v392_v58 = vpop.permute.xlu0 %391 }
  0x97   : > { %v407_v59 = vpop.permute.xlu1 %406  ;;  %v397_v60 = vpop.permute.xlu0 %396 }
  0x9b   : > { %v417_v61 = vpop.permute.xlu1 %416  ;;  %v412_v62 = vpop.permute.xlu0 %411 }
  0x9f   : > { %v427_v63 = vpop.permute.xlu1 %426  ;;  %v422_v0 = vpop.permute.xlu0 %421 }
  0xa3   : > { %v437_v1 = vpop.permute.xlu1 %436  ;;  %v432_v2 = vpop.permute.xlu0 %431 }
  0xa7   : > { %v447_v3 = vpop.permute.xlu1 %446  ;;  %v442_v4 = vpop.permute.xlu0 %441 }
  0xab   : > { %v457_v13 = vpop.permute.xlu1 %456  ;;  %v452_v14 = vpop.permute.xlu0 %451 }
  0xaf   : > { %v467_v35 = vpop.permute.xlu1 %466  ;;  %v462_v36 = vpop.permute.xlu0 %461 }
  0xfc   : > { %v791_v5 = vpop.f32.mrb[0].mxu0  ;;  %v803_v6 = vpop.f32.mrb[0].mxu1 }
  0xfd   : > { %v470_v7 = vmul.f32 %v791_v5, %v397_v60  ;;  %v478_v8 = vmul.f32 %v803_v6, %v437_v1  ;;  %v294_v9 = vpop.f32.mrb[1].mxu0  ;;  %v334_v10 = vpop.f32.mrb[1].mxu1 }
  0xfe   : > { %v469_v11 = vmul.f32 %v392_v58, %v294_v9  ;;  %v477_v12 = vmul.f32 %v432_v2, %v334_v10 }
 0x100   : > { %v681_v15 = vpack.c.bf16 %v470_v7, %v469_v11  ;;  %v701_v16 = vpack.c.bf16 %v478_v8, %v477_v12  ;;  %v794_v17 = vpop.f32.mrb[2].mxu0  ;;  %v806_v18 = vpop.f32.mrb[2].mxu1 }
 0x101   : > { %v472_v19 = vmul.f32 %v794_v17, %v407_v59  ;;  %v480_v20 = vmul.f32 %v806_v18, %v447_v3  ;;  %v304_v21 = vpop.f32.mrb[3].mxu0  ;;  %v344_v22 = vpop.f32.mrb[3].mxu1 }
 0x102   : > { %682 = vst [vmem:[%s1006_s5] sm:$0xff] %v681_v15   ;;  %721 = vst [vmem:[%s1006_s5 + $0x20] sm:$0xff] %v701_v16   ;;  %v471_v23 = vmul.f32 %v402_v57, %v304_v21  ;;  %v479_v24 = vmul.f32 %v442_v4, %v344_v22 }
 0x104   : > { %v686_v25 = vpack.c.bf16 %v472_v19, %v471_v23  ;;  %v706_v26 = vpack.c.bf16 %v480_v20, %v479_v24  ;;  %v797_v27 = vpop.f32.mrb[4].mxu0  ;;  %v809_v28 = vpop.f32.mrb[4].mxu1 }
 0x105   : > { %v474_v29 = vmul.f32 %v797_v27, %v417_v61  ;;  %v482_v30 = vmul.f32 %v809_v28, %v457_v13  ;;  %v314_v31 = vpop.f32.mrb[5].mxu0  ;;  %v354_v32 = vpop.f32.mrb[5].mxu1 }
 0x106   : > { %718 = vst [vmem:[%s1006_s5 + $0x8] sm:$0xff] %v686_v25   ;;  %722 = vst [vmem:[%s1006_s5 + $0x28] sm:$0xff] %v706_v26   ;;  %v473_v33 = vmul.f32 %v412_v62, %v314_v31  ;;  %v481_v34 = vmul.f32 %v452_v14, %v354_v32 }
 0x108   : > { %v691_v37 = vpack.c.bf16 %v474_v29, %v473_v33  ;;  %v711_v38 = vpack.c.bf16 %v482_v30, %v481_v34  ;;  %v800_v39 = vpop.f32.mrb[6].mxu0  ;;  %v812_v40 = vpop.f32.mrb[6].mxu1 }
 0x109   : > { %v476_v41 = vmul.f32 %v800_v39, %v427_v63  ;;  %v484_v42 = vmul.f32 %v812_v40, %v467_v35  ;;  %v324_v43 = vpop.f32.mrb[7].mxu0  ;;  %v364_v44 = vpop.f32.mrb[7].mxu1 }
 0x10a   : > { %719 = vst [vmem:[%s1006_s5 + $0x10] sm:$0xff] %v691_v37   ;;  %723 = vst [vmem:[%s1006_s5 + $0x30] sm:$0xff] %v711_v38   ;;  %v475_v45 = vmul.f32 %v422_v0, %v324_v43  ;;  %v483_v46 = vmul.f32 %v462_v36, %v364_v44 }
 0x10c   : > { %v696_v47 = vpack.c.bf16 %v476_v41, %v475_v45  ;;  %v716_v48 = vpack.c.bf16 %v484_v42, %v483_v46 }
 0x10e   : > { %720 = vst [vmem:[%s1006_s5 + $0x18] sm:$0xff] %v696_v47   ;;  %724 = vst [vmem:[%s1006_s5 + $0x38] sm:$0xff] %v716_v48  }
 0x10f PF: > { %s13_s12 = sadd.s32 1, %s878_s12  }
 0x110   : > { %p10_p4 = scmp.ge.s32.totalorder %s13_s12, 5  }
 0x112   :  { %12 = sbr.rel (!%p10_p4) target bundleno = 1 (0x1), region = 65 }

// kernel: simplified_gcn_forward.11
= control target key start
LH: loop header
LB: loop body
LE: loop exit
PB: predicated region body
PF: predicated region fallthrough
CT: control target
= control target key end

     0   :  { %s1437_s15 = smov 0   ;;  %s1439_s16 = smov 0   ;;  %s1645_s0 = inlined_call_operand.vmem [shape: bf16[384,384], index: 0, kind: input, shape index: {}]   ;;  %s1646_s1 = inlined_call_operand.vmem [shape: bf16[384,128], index: 1, kind: input, shape index: {}]   ;;  %s1647_s2 = inlined_call_operand.vmem [shape: f32[384,1], index: 2, kind: input, shape index: {}]   ;;  %s1648_s3 = inlined_call_operand.vmem [shape: f32[1,128], index: 3, kind: input, shape index: {}]   ;;  %s1649_s4 = inlined_call_operand.vmem [shape: f32[384,128], index: 4, kind: output, shape index: {}]  }
   0x1   :  { %s1441_s17 = smov 0  }
   0x2 LB: > { %s26_s18 = sadd.s32 1, %s1405_s16  ;;  %p1133_p0 = scmp.ge.s32.totalorder %s1409_s17, 1  ;;  %s1409_s17 = sphi %s1441_s17, %s14_s17   ;;  %s1405_s16 = sphi %s1439_s16, %s1651_s16   ;;  %s1401_s15 = sphi %s1437_s15, %s1650_s15  }
   0x3   : > { %p28_p1 = scmp.ge.s32.totalorder %s26_s18, 3  ;;  %p194_p2 = scmp.lt.s32.totalorder %s1409_s17, 4 }
   0x5   : > { %s1653_s18 = smov (%p28_p1, %s26_s18), 0  ;;  %p195_p3 = pnand %p1133_p0, %p194_p2 }
   0x6   : > { %v1331_v0 = vld [vmem:[%s1646_s1 + $0x40] sm:$0xff] (!%p195_p3)   ;;  %v1334_v3 = vld [vmem:[%s1646_s1 + $0x48] sm:$0xff] (!%p195_p3)   ;;  %v1411_v4 = vmov (!%p195_p3), 0   ;;  %v1337_v7 = vld [vmem:[%s1646_s1 + $0x50] sm:$0xff] (!%p195_p3)   ;;  %s1134_s9 = sshll.u32 (!%p195_p3), %s1401_s15, 4 }
   0x7   : > { %198 = sbr.rel (%p195_p3) target bundleno = 319 (0x13f), region = 36  ;;  %v1332_v1 = vld [vmem:[%s1646_s1] sm:$0xff] (!%p195_p3)   ;;  %1191 = vmatprep.subr.bf16.mxu0 (!%p195_p3), %v1331_v0  ;;  %1329 = vset.pattern.permute.xlu0 (!%p195_p3), %v1411_v4  ;;  %v1335_v5 = vld [vmem:[%s1646_s1 + $0x8] sm:$0xff] (!%p195_p3)   ;;  %v1338_v8 = vld [vmem:[%s1646_s1 + $0x10] sm:$0xff] (!%p195_p3)   ;;  %p232_p4 = scmp.lt.s32.totalorder (!%p195_p3), %s1134_s9, 47 }
   0x8   : > { %v1333_v2 = vld [vmem:[%s1646_s1 + $0x80] sm:$0xff] (!%p195_p3)   ;;  %1192 = vmatpush3.bf16.msra.mxu0 (!%p195_p3), %v1332_v1  ;;  %1330 = vset.pattern.permute.xlu1 (!%p195_p3), %v1411_v4  ;;  %v1336_v6 = vld [vmem:[%s1646_s1 + $0x88] sm:$0xff] (!%p195_p3)   ;;  %v1339_v9 = vld [vmem:[%s1646_s1 + $0x90] sm:$0xff] (!%p195_p3)  }
   0x9   : > { %1271 = vmatprep.subr.bf16.mxu1 (!%p195_p3), %v1333_v2  ;;  %1193 = vmatprep.subr.bf16.mxu0 (!%p195_p3), %v1334_v3  ;;  %v1340_v10 = vld [vmem:[%s1646_s1 + $0x58] sm:$0xff] (!%p195_p3)   ;;  %v1343_v13 = vld [vmem:[%s1646_s1 + $0x60] sm:$0xff] (!%p195_p3)   ;;  %v1346_v16 = vld [vmem:[%s1646_s1 + $0x68] sm:$0xff] (!%p195_p3)  }
   0xa   : > { %1272 = vmatpush3.bf16.msra.mxu1 (!%p195_p3), %v1333_v2  ;;  %v1341_v11 = vld [vmem:[%s1646_s1 + $0x18] sm:$0xff] (!%p195_p3)   ;;  %v1345_v14 = vld [vmem:[%s1646_s1 + $0xa0] sm:$0xff] (!%p195_p3)   ;;  %v1348_v17 = vld [vmem:[%s1646_s1 + $0xa8] sm:$0xff] (!%p195_p3)  }
   0xb   : > { %1273 = vmatprep.subr.bf16.mxu1 (!%p195_p3), %v1336_v6  ;;  %v1342_v12 = vld [vmem:[%s1646_s1 + $0x98] sm:$0xff] (!%p195_p3)   ;;  %v1344_v15 = vld [vmem:[%s1646_s1 + $0x20] sm:$0xff] (!%p195_p3)   ;;  %v1347_v18 = vld [vmem:[%s1646_s1 + $0x28] sm:$0xff] (!%p195_p3)  }
   0xc   : > { %1194 = vmatpush3.bf16.msra.mxu0 (!%p195_p3), %v1335_v5  ;;  %v1349_v19 = vld [vmem:[%s1646_s1 + $0x70] sm:$0xff] (!%p195_p3)   ;;  %v1352_v22 = vld [vmem:[%s1646_s1 + $0x78] sm:$0xff] (!%p195_p3)  }
   0xd   : > { %1195 = vmatprep.subr.bf16.mxu0 (!%p195_p3), %v1337_v7  ;;  %v1350_v20 = vld [vmem:[%s1646_s1 + $0x30] sm:$0xff] (!%p195_p3)   ;;  %v1354_v23 = vld [vmem:[%s1646_s1 + $0xb8] sm:$0xff] (!%p195_p3)  }
   0xe   : > { %1274 = vmatpush3.bf16.msra.mxu1 %v1336_v6  ;;  %s1655_s9 = smov (!%p232_p4, %s1134_s9), 47  ;;  %v1351_v21 = vld [vmem:[%s1646_s1 + $0xb0] sm:$0xff]   ;;  %v1353_v26 = vld [vmem:[%s1646_s1 + $0x38] sm:$0xff]  }
   0xf   : > { %1275 = vmatprep.subr.bf16.mxu1 %v1339_v9  ;;  %s1303_s5 = smul.u32 12, %s1655_s9  ;;  %s1137_s27 = sshll.u32 %s1655_s9, 3 }
  0x10   : > { %1196 = vmatpush3.bf16.msra.mxu0 %v1338_v8  ;;  %s1552_s30 = scalar_lea.vmem %s1647_s2, %s1137_s27  ;;  %s1596_s10 = scalar_lea.vmem %s1649_s4, %s1137_s27 }
  0x11   : > { %1197 = vmatprep.subr.bf16.mxu0 %v1340_v10  ;;  %s1527_s21 = scalar_lea.vmem %s1645_s0, %s1303_s5  ;;  %v893_v35 = vld [vmem:[%s1552_s30] sm:$0xff]  ;;  %v895_v36 = vld [vmem:[%s1552_s30 + $0x10] sm:$0xff]  ;;  %v894_v37 = vld [vmem:[%s1552_s30 + $0x8] sm:$0xff] }
  0x12   : > { %1276 = vmatpush3.bf16.msra.mxu1 %v1339_v9  ;;  %v1357_v24 = vld [vmem:[%s1527_s21 + $0x4] ss:$12 sps:$4 sm:$0xff]   ;;  %v1358_v25 = vld [vmem:[%s1527_s21 + $0x8] ss:$12 sps:$4 sm:$0xff]   ;;  %v1355_v27 = vld [vmem:[%s1527_s21] ss:$12 sps:$4 sm:$0xff]   ;;  %911 = vperm.xlu0 %1329, %v893_v35  }
  0x13   : > { %1277 = vmatprep.subr.bf16.mxu1 %v1342_v12  ;;  %680 = vmatprep.mubr.bf16.mxu0 %v1357_v24  ;;  %v1360_v28 = vld [vmem:[%s1527_s21 + $0x1c] ss:$12 sps:$4 sm:$0xff]   ;;  %v1359_v29 = vld [vmem:[%s1527_s21 + $0x20] ss:$12 sps:$4 sm:$0xff]   ;;  %v1366_v30 = vld [vmem:[%s1527_s21 + $0x38] ss:$12 sps:$4 sm:$0xff]  }
  0x14   : > { %1198 = vmatpush3.bf16.msra.mxu0 %v1341_v11  ;;  %1287 = vmatprep.mubr.bf16.mxu1 %v1358_v25  ;;  %v1362_v31 = vld [vmem:[%s1527_s21 + $0x18] ss:$12 sps:$4 sm:$0xff]   ;;  %v1363_v32 = vld [vmem:[%s1527_s21 + $0x34] ss:$12 sps:$4 sm:$0xff]   ;;  %v1367_v33 = vld [vmem:[%s1527_s21 + $0x50] ss:$12 sps:$4 sm:$0xff]  }
  0x15   : > { %1199 = vmatprep.subr.bf16.mxu0 %v1343_v13  ;;  %v1374_v34 = vld [vmem:[%s1527_s21 + $0x68] ss:$12 sps:$4 sm:$0xff]   ;;  %921 = vperm.xlu1 %1330, %v895_v36   ;;  %v896_v38 = vld [vmem:[%s1552_s30 + $0x18] sm:$0xff]  ;;  %v1375_v41 = vld [vmem:[%s1527_s21 + $0x80] ss:$12 sps:$4 sm:$0xff]  }
  0x16   : > { %1278 = vmatpush3.bf16.msra.mxu1 %v1342_v12  ;;  %v1365_v39 = vld [vmem:[%s1527_s21 + $0x30] ss:$12 sps:$4 sm:$0xff]   ;;  %v1368_v40 = vld [vmem:[%s1527_s21 + $0x4c] ss:$12 sps:$4 sm:$0xff]   ;;  %916 = vperm.xlu0 %1329, %v894_v37   ;;  %v897_v42 = vld [vmem:[%s1552_s30 + $0x20] sm:$0xff] }
  0x17   : > { %1279 = vmatprep.subr.bf16.mxu1 %v1345_v14  ;;  %v1382_v43 = vld [vmem:[%s1527_s21 + $0x98] ss:$12 sps:$4 sm:$0xff]   ;;  %v898_v44 = vld [vmem:[%s1552_s30 + $0x28] sm:$0xff]  ;;  %v899_v45 = vld [vmem:[%s1552_s30 + $0x30] sm:$0xff] }
  0x18   : > { %1200 = vmatpush3.bf16.msra.mxu0 %v1344_v15  ;;  %v900_v46 = vld [vmem:[%s1552_s30 + $0x38] sm:$0xff]  ;;  %v1370_v47 = vld [vmem:[%s1527_s21 + $0x48] ss:$12 sps:$4 sm:$0xff]   ;;  %v1371_v48 = vld [vmem:[%s1527_s21 + $0x64] ss:$12 sps:$4 sm:$0xff]  }
  0x19   : > { %1201 = vmatprep.subr.bf16.mxu0 %v1346_v16  ;;  %926 = vperm.xlu1 %1330, %v896_v38   ;;  %v1383_v49 = vld [vmem:[%s1527_s21 + $0xb0] ss:$12 sps:$4 sm:$0xff]   ;;  %v901_v50 = vld [vmem:[%s1552_s30 + $0x40] sm:$0xff]  ;;  %v902_v51 = vld [vmem:[%s1552_s30 + $0x48] sm:$0xff] }
  0x1a   : > { %1280 = vmatpush3.bf16.msra.mxu1 %v1345_v14  ;;  %931 = vperm.xlu0 %1329, %v897_v42   ;;  %v903_v52 = vld [vmem:[%s1552_s30 + $0x50] sm:$0xff]  ;;  %v904_v53 = vld [vmem:[%s1552_s30 + $0x58] sm:$0xff]  ;;  %v1373_v54 = vld [vmem:[%s1527_s21 + $0x60] ss:$12 sps:$4 sm:$0xff]  }
  0x1b   : > { %1281 = vmatprep.subr.bf16.mxu1 %v1348_v17  ;;  %v1376_v55 = vld [vmem:[%s1527_s21 + $0x7c] ss:$12 sps:$4 sm:$0xff]   ;;  %v905_v56 = vld [vmem:[%s1552_s30 + $0x60] sm:$0xff]  ;;  %v907_v58 = vld [vmem:[%s1552_s30 + $0x70] sm:$0xff] }
  0x1c   : > { %1202 = vmatpush3.bf16.msra.mxu0 %v1347_v18  ;;  %v906_v57 = vld [vmem:[%s1552_s30 + $0x68] sm:$0xff]  ;;  %v908_v59 = vld [vmem:[%s1552_s30 + $0x78] sm:$0xff]  ;;  %v1379_v61 = vld [vmem:[%s1527_s21 + $0x94] ss:$12 sps:$4 sm:$0xff]  }
  0x1d   : > { %1203 = vmatprep.subr.bf16.mxu0 %v1349_v19  ;;  %936 = vperm.xlu1 %1330, %v898_v44   ;;  %v1378_v60 = vld [vmem:[%s1527_s21 + $0x78] ss:$12 sps:$4 sm:$0xff]   ;;  %v1381_v62 = vld [vmem:[%s1527_s21 + $0x90] ss:$12 sps:$4 sm:$0xff]   ;;  %v1386_v0 = vld [vmem:[%s1527_s21 + $0xa8] ss:$12 sps:$4 sm:$0xff]  }
  0x1e   : > { %1282 = vmatpush3.bf16.msra.mxu1 %v1348_v17  ;;  %941 = vperm.xlu0 %1329, %v899_v45   ;;  %v1384_v63 = vld [vmem:[%s1527_s21 + $0xac] ss:$12 sps:$4 sm:$0xff]   ;;  %v1589_v12 = vld [vmem:[%s1648_s3] ss:$0 sm:$0xff] }
  0x1f   : > { %1283 = vmatprep.subr.bf16.mxu1 %v1351_v21 }
  0x20   : > { %1204 = vmatpush3.bf16.msra.mxu0 %v1350_v20 }
  0x21   : > { %1205 = vmatprep.subr.bf16.mxu0 %v1352_v22  ;;  %946 = vperm.xlu1 %1330, %v900_v46  }
  0x22   : > { %1284 = vmatpush3.bf16.msra.mxu1 %v1351_v21  ;;  %951 = vperm.xlu0 %1329, %v901_v50  }
  0x23   : > { %1285 = vmatprep.subr.bf16.mxu1 %v1354_v23 }
  0x24   : > { %1206 = vmatpush3.bf16.msra.mxu0 %v1353_v26 }
  0x25   : > { %956 = vperm.xlu1 %1330, %v902_v51  }
  0x26   : > { %1286 = vmatpush3.bf16.msra.mxu1 %v1354_v23  ;;  %961 = vperm.xlu0 %1329, %v903_v52  }
  0x27   : > { %681 = vmatmul.mubr.bf16.vlgmr.msra.gmra.mrb[0].mxu0 %v1355_v27 }
  0x28   : > { %688 = vmatprep.mubr.bf16.mxu0 %v1360_v28 }
  0x29   : > { %1288 = vmatmul.mubr.bf16.vlgmr.msra.gmra.mrb[0].mxu1 %v1359_v29  ;;  %966 = vperm.xlu1 %1330, %v904_v53  }
  0x2a   : > { %1291 = vmatprep.mubr.bf16.mxu1 %v1366_v30  ;;  %971 = vperm.xlu0 %1329, %v905_v56  }
  0x2d   : > { %976 = vperm.xlu1 %1330, %v906_v57  }
  0x2e   : > { %981 = vperm.xlu0 %1329, %v907_v58  }
  0x2f   : > { %689 = vmatmul.mubr.bf16.gmra.mrb[4].mxu0 %v1362_v31 }
  0x30   : > { %696 = vmatprep.mubr.bf16.mxu0 %v1363_v32 }
  0x31   : > { %1292 = vmatmul.mubr.bf16.gmra.mrb[4].mxu1 %v1367_v33  ;;  %986 = vperm.xlu1 %1330, %v908_v59  }
  0x32   : > { %1295 = vmatprep.mubr.bf16.mxu1 %v1374_v34 }
  0x37   : > { %697 = vmatmul.mubr.bf16.gmra.mrb[8].mxu0 %v1365_v39 }
  0x38   : > { %704 = vmatprep.mubr.bf16.mxu0 %v1368_v40 }
  0x39   : > { %1296 = vmatmul.mubr.bf16.gmra.mrb[8].mxu1 %v1375_v41 }
  0x3a   : > { %1299 = vmatprep.mubr.bf16.mxu1 %v1382_v43 }
  0x3f   : > { %705 = vmatmul.mubr.bf16.gmra.mrb[12].mxu0 %v1370_v47 }
  0x40   : > { %712 = vmatprep.mubr.bf16.mxu0 %v1371_v48 }
  0x41   : > { %1300 = vmatmul.mubr.bf16.gmra.mrb[12].mxu1 %v1383_v49 }
  0x47   : > { %713 = vmatmul.mubr.bf16.gmra.mrb[16].mxu0 %v1373_v54 }
  0x48   : > { %720 = vmatprep.mubr.bf16.mxu0 %v1376_v55 }
  0x4f   : > { %721 = vmatmul.mubr.bf16.gmra.mrb[20].mxu0 %v1378_v60 }
  0x50   : > { %728 = vmatprep.mubr.bf16.mxu0 %v1379_v61 }
  0x57   : > { %729 = vmatmul.mubr.bf16.gmra.mrb[24].mxu0 %v1381_v62 }
  0x58   : > { %736 = vmatprep.mubr.bf16.mxu0 %v1384_v63 }
  0x5f   : > { %737 = vmatmul.mubr.bf16.gmra.mrb[28].mxu0 %v1386_v0 }
  0x91   : > { %v912_v1 = vpop.permute.xlu0 %911 }
  0x94   : > { %v922_v20 = vpop.permute.xlu1 %921 }
  0x95   : > { %v917_v14 = vpop.permute.xlu0 %916 }
  0x98   : > { %v927_v34 = vpop.permute.xlu1 %926 }
  0x99   : > { %v932_v48 = vpop.permute.xlu0 %931 }
  0x9c   : > { %v937_v52 = vpop.permute.xlu1 %936 }
  0xfa   : > { %v1207_v2 = vpop.f32.mrb[0].mxu0 }
  0xfb   : > { %v1208_v3 = vpop.f32.mrb[1].mxu0 }
  0xfc   : > { %v1209_v4 = vadd.f32 %v1208_v3, %v1207_v2  ;;  %v1210_v5 = vpop.f32.mrb[2].mxu0  ;;  %v1289_v6 = vpop.f32.mrb[0].mxu1 }
  0xfd   : > { %v1211_v7 = vpop.f32.mrb[3].mxu0  ;;  %v779_v8 = vpop.f32.mrb[1].mxu1 }
  0xfe   : > { %v1212_v9 = vadd.f32 %v1211_v7, %v1210_v5  ;;  %v780_v10 = vadd.f32 %v1209_v4, %v779_v8  ;;  %v1290_v11 = vpop.f32.mrb[2].mxu1  ;;  %v942_v2 = vpop.permute.xlu0 %941 }
  0xff   : > { %v782_v13 = vpop.f32.mrb[3].mxu1 }
 0x100   : > { %v989_v15 = vmul.f32 %v912_v1, %v780_v10  ;;  %v783_v16 = vadd.f32 %v1212_v9, %v782_v13 }
 0x102   : > { %v1012_v17 = vadd.f32 %v1589_v12, %v989_v15  ;;  %v990_v18 = vmul.f32 %v917_v14, %v783_v16  ;;  %v1213_v19 = vpop.f32.mrb[4].mxu0 }
 0x103   : > { %v1214_v21 = vpop.f32.mrb[5].mxu0 }
 0x104   : > { %1028 = vst [vmem:[%s1596_s10] sm:$0xff] %v1012_v17  ;;  %v1013_v22 = vadd.f32 %v1589_v12, %v990_v18  ;;  %v1215_v23 = vadd.f32 %v1214_v21, %v1213_v19  ;;  %v1216_v24 = vpop.f32.mrb[6].mxu0  ;;  %v1293_v25 = vpop.f32.mrb[4].mxu1 }
 0x105   : > { %v1217_v26 = vpop.f32.mrb[7].mxu0  ;;  %v795_v27 = vpop.f32.mrb[5].mxu1 }
 0x106   : > { %1029 = vst [vmem:[%s1596_s10 + $0x8] sm:$0xff] %v1013_v22  ;;  %v788_v28 = vadd.f32 %v1289_v6, %v1215_v23  ;;  %v1218_v29 = vadd.f32 %v1217_v26, %v1216_v24  ;;  %v1294_v30 = vpop.f32.mrb[6].mxu1  ;;  %v947_v6 = vpop.permute.xlu1 %946 }
 0x107   : > { %v798_v31 = vpop.f32.mrb[7].mxu1  ;;  %v952_v18 = vpop.permute.xlu0 %951 }
 0x108   : > { %v991_v32 = vmul.f32 %v922_v20, %v788_v28  ;;  %v791_v33 = vadd.f32 %v1290_v11, %v1218_v29 }
 0x10a   : > { %v1014_v35 = vadd.f32 %v1589_v12, %v991_v32  ;;  %v992_v36 = vmul.f32 %v927_v34, %v791_v33  ;;  %v1219_v37 = vpop.f32.mrb[8].mxu0  ;;  %v957_v21 = vpop.permute.xlu1 %956 }
 0x10b   : > { %v1220_v38 = vpop.f32.mrb[9].mxu0  ;;  %v962_v32 = vpop.permute.xlu0 %961 }
 0x10c   : > { %1030 = vst [vmem:[%s1596_s10 + $0x10] sm:$0xff] %v1014_v35  ;;  %v1015_v39 = vadd.f32 %v1589_v12, %v992_v36  ;;  %v1221_v40 = vadd.f32 %v1220_v38, %v1219_v37  ;;  %v1222_v41 = vpop.f32.mrb[10].mxu0  ;;  %v1297_v42 = vpop.f32.mrb[8].mxu1 }
 0x10d   : > { %v1223_v43 = vpop.f32.mrb[11].mxu0  ;;  %v811_v44 = vpop.f32.mrb[9].mxu1 }
 0x10e   : > { %1031 = vst [vmem:[%s1596_s10 + $0x18] sm:$0xff] %v1015_v39  ;;  %v1224_v45 = vadd.f32 %v1223_v43, %v1222_v41  ;;  %v796_v46 = vadd.f32 %v1221_v40, %v795_v27  ;;  %v1298_v47 = vpop.f32.mrb[10].mxu1  ;;  %v967_v35 = vpop.permute.xlu1 %966 }
 0x10f   : > { %v814_v49 = vpop.f32.mrb[11].mxu1 }
 0x110   : > { %v993_v50 = vmul.f32 %v932_v48, %v796_v46  ;;  %v799_v51 = vadd.f32 %v1224_v45, %v798_v31  ;;  %v972_v46 = vpop.permute.xlu0 %971 }
 0x112   : > { %v1016_v53 = vadd.f32 %v1589_v12, %v993_v50  ;;  %v994_v54 = vmul.f32 %v937_v52, %v799_v51  ;;  %v1225_v55 = vpop.f32.mrb[12].mxu0 }
 0x113   : > { %v1226_v56 = vpop.f32.mrb[13].mxu0 }
 0x114   : > { %1032 = vst [vmem:[%s1596_s10 + $0x20] sm:$0xff] %v1016_v53  ;;  %v1017_v57 = vadd.f32 %v1589_v12, %v994_v54  ;;  %v1227_v58 = vadd.f32 %v1226_v56, %v1225_v55  ;;  %v1228_v59 = vpop.f32.mrb[14].mxu0  ;;  %v1609_v60 = vpop.f32.mrb[12].mxu1 }
 0x115   : > { %v1229_v61 = vpop.f32.mrb[15].mxu0  ;;  %v827_v62 = vpop.f32.mrb[13].mxu1 }
 0x116   : > { %1033 = vst [vmem:[%s1596_s10 + $0x28] sm:$0xff] %v1017_v57  ;;  %v804_v63 = vadd.f32 %v1293_v25, %v1227_v58  ;;  %v1230_v0 = vadd.f32 %v1229_v61, %v1228_v59  ;;  %v1612_v1 = vpop.f32.mrb[14].mxu1  ;;  %v982_v61 = vpop.permute.xlu0 %981 }
 0x117   : > { %v830_v3 = vpop.f32.mrb[15].mxu1 }
 0x118   : > { %v995_v4 = vmul.f32 %v942_v2, %v804_v63  ;;  %v807_v5 = vadd.f32 %v1294_v30, %v1230_v0 }
 0x11a   : > { %v1018_v7 = vadd.f32 %v1589_v12, %v995_v4  ;;  %v996_v8 = vmul.f32 %v947_v6, %v807_v5  ;;  %v1231_v9 = vpop.f32.mrb[16].mxu0 }
 0x11b   : > { %v1232_v10 = vpop.f32.mrb[17].mxu0 }
 0x11c   : > { %1034 = vst [vmem:[%s1596_s10 + $0x30] sm:$0xff] %v1018_v7  ;;  %v1019_v11 = vadd.f32 %v1589_v12, %v996_v8  ;;  %v1233_v13 = vadd.f32 %v1232_v10, %v1231_v9  ;;  %v1234_v14 = vpop.f32.mrb[18].mxu0 }
 0x11d   : > { %v1235_v15 = vpop.f32.mrb[19].mxu0 }
 0x11e   : > { %1035 = vst [vmem:[%s1596_s10 + $0x38] sm:$0xff] %v1019_v11  ;;  %v1236_v16 = vadd.f32 %v1235_v15, %v1234_v14  ;;  %v812_v17 = vadd.f32 %v1233_v13, %v811_v44 }
 0x120   : > { %v997_v19 = vmul.f32 %v952_v18, %v812_v17  ;;  %v815_v20 = vadd.f32 %v1236_v16, %v814_v49  ;;  %v977_v49 = vpop.permute.xlu1 %976 }
 0x122   : > { %v1020_v22 = vadd.f32 %v1589_v12, %v997_v19  ;;  %v998_v23 = vmul.f32 %v957_v21, %v815_v20  ;;  %v1237_v24 = vpop.f32.mrb[20].mxu0 }
 0x123   : > { %v1238_v25 = vpop.f32.mrb[21].mxu0 }
 0x124   : > { %1036 = vst [vmem:[%s1596_s10 + $0x40] sm:$0xff] %v1020_v22  ;;  %v1021_v26 = vadd.f32 %v1589_v12, %v998_v23  ;;  %v1239_v27 = vadd.f32 %v1238_v25, %v1237_v24  ;;  %v1240_v28 = vpop.f32.mrb[22].mxu0  ;;  %v987_v0 = vpop.permute.xlu1 %986 }
 0x125   : > { %v1241_v29 = vpop.f32.mrb[23].mxu0 }
 0x126   : > { %1037 = vst [vmem:[%s1596_s10 + $0x48] sm:$0xff] %v1021_v26  ;;  %v820_v30 = vadd.f32 %v1297_v42, %v1239_v27  ;;  %v1242_v31 = vadd.f32 %v1241_v29, %v1240_v28 }
 0x128   : > { %v999_v33 = vmul.f32 %v962_v32, %v820_v30  ;;  %v823_v34 = vadd.f32 %v1298_v47, %v1242_v31 }
 0x12a   : > { %v1022_v36 = vadd.f32 %v1589_v12, %v999_v33  ;;  %v1000_v37 = vmul.f32 %v967_v35, %v823_v34  ;;  %v1243_v38 = vpop.f32.mrb[24].mxu0 }
 0x12b   : > { %v1244_v39 = vpop.f32.mrb[25].mxu0 }
 0x12c   : > { %1038 = vst [vmem:[%s1596_s10 + $0x50] sm:$0xff] %v1022_v36  ;;  %v1023_v40 = vadd.f32 %v1589_v12, %v1000_v37  ;;  %v1245_v41 = vadd.f32 %v1244_v39, %v1243_v38  ;;  %v1246_v43 = vpop.f32.mrb[26].mxu0 }
 0x12d   : > { %v1247_v44 = vpop.f32.mrb[27].mxu0 }
 0x12e   : > { %1039 = vst [vmem:[%s1596_s10 + $0x58] sm:$0xff] %v1023_v40  ;;  %v1248_v42 = vadd.f32 %v1247_v44, %v1246_v43  ;;  %v828_v45 = vadd.f32 %v1245_v41, %v827_v62 }
 0x130   : > { %v1001_v48 = vmul.f32 %v972_v46, %v828_v45  ;;  %v831_v47 = vadd.f32 %v1248_v42, %v830_v3 }
 0x132   : > { %v1024_v50 = vadd.f32 %v1589_v12, %v1001_v48  ;;  %v1002_v51 = vmul.f32 %v977_v49, %v831_v47  ;;  %v1249_v52 = vpop.f32.mrb[28].mxu0 }
 0x133   : > { %v1250_v53 = vpop.f32.mrb[29].mxu0 }
 0x134   : > { %1040 = vst [vmem:[%s1596_s10 + $0x60] sm:$0xff] %v1024_v50  ;;  %v1025_v54 = vadd.f32 %v1589_v12, %v1002_v51  ;;  %v1251_v55 = vadd.f32 %v1250_v53, %v1249_v52  ;;  %v1252_v56 = vpop.f32.mrb[30].mxu0 }
 0x135   : > { %v1253_v57 = vpop.f32.mrb[31].mxu0 }
 0x136   : > { %1041 = vst [vmem:[%s1596_s10 + $0x68] sm:$0xff] %v1025_v54  ;;  %v836_v58 = vadd.f32 %v1609_v60, %v1251_v55  ;;  %v1254_v59 = vadd.f32 %v1253_v57, %v1252_v56 }
 0x138   : > { %v1003_v62 = vmul.f32 %v982_v61, %v836_v58  ;;  %v839_v63 = vadd.f32 %v1612_v1, %v1254_v59 }
 0x13a   : > { %v1026_v2 = vadd.f32 %v1589_v12, %v1003_v62  ;;  %v1004_v3 = vmul.f32 %v987_v0, %v839_v63 }
 0x13c   : > { %1042 = vst [vmem:[%s1596_s10 + $0x70] sm:$0xff] %v1026_v2  ;;  %v1027_v4 = vadd.f32 %v1589_v12, %v1004_v3 }
 0x13e   : > { %1043 = vst [vmem:[%s1596_s10 + $0x78] sm:$0xff] %v1027_v4 }
 0x13f PF: > { %s14_s17 = sadd.s32 1, %s1409_s17   ;;  %s1650_s15 = smov %s1405_s16 }
 0x140   : > { %p11_p5 = scmp.ge.s32.totalorder %s14_s17, 5   ;;  %s1651_s16 = smov %s1653_s18 }
 0x142   :  { %13 = sbr.rel (!%p11_p5) target bundleno = 2 (0x2), region = 78 }

// kernel: simplified_gcn_forward.7
= control target key start
LH: loop header
LB: loop body
LE: loop exit
PB: predicated region body
PF: predicated region fallthrough
CT: control target
= control target key end

     0   :  { %s1453_s15 = smov 0   ;;  %s1455_s16 = smov 0   ;;  %s1667_s0 = inlined_call_operand.vmem [shape: bf16[384,384], index: 0, kind: input, shape index: {}]   ;;  %s1668_s1 = inlined_call_operand.vmem [shape: bf16[384,128], index: 1, kind: input, shape index: {}]   ;;  %s1669_s2 = inlined_call_operand.vmem [shape: f32[384,1], index: 2, kind: input, shape index: {}]   ;;  %s1670_s3 = inlined_call_operand.vmem [shape: f32[1,128], index: 3, kind: input, shape index: {}]   ;;  %s1671_s4 = inlined_call_operand.vmem [shape: f32[384,128], index: 4, kind: output, shape index: {}]  }
   0x1   :  { %s1457_s17 = smov 0  }
   0x2 LB: > { %s26_s18 = sadd.s32 1, %s1421_s16  ;;  %p1149_p0 = scmp.ge.s32.totalorder %s1425_s17, 1  ;;  %s1425_s17 = sphi %s1457_s17, %s14_s17   ;;  %s1421_s16 = sphi %s1455_s16, %s1673_s16   ;;  %s1417_s15 = sphi %s1453_s15, %s1672_s15  }
   0x3   : > { %p28_p1 = scmp.ge.s32.totalorder %s26_s18, 3  ;;  %p194_p2 = scmp.lt.s32.totalorder %s1425_s17, 4 }
   0x5   : > { %s1675_s18 = smov (%p28_p1, %s26_s18), 0  ;;  %p195_p3 = pnand %p1149_p0, %p194_p2 }
   0x6   : > { %v1347_v0 = vld [vmem:[%s1668_s1 + $0x40] sm:$0xff] (!%p195_p3)   ;;  %v1350_v3 = vld [vmem:[%s1668_s1 + $0x48] sm:$0xff] (!%p195_p3)   ;;  %v1427_v4 = vmov (!%p195_p3), 0   ;;  %v1353_v7 = vld [vmem:[%s1668_s1 + $0x50] sm:$0xff] (!%p195_p3)   ;;  %s1150_s9 = sshll.u32 (!%p195_p3), %s1417_s15, 4 }
   0x7   : > { %198 = sbr.rel (%p195_p3) target bundleno = 321 (0x141), region = 36  ;;  %v1348_v1 = vld [vmem:[%s1668_s1] sm:$0xff] (!%p195_p3)   ;;  %1207 = vmatprep.subr.bf16.mxu0 (!%p195_p3), %v1347_v0  ;;  %1345 = vset.pattern.permute.xlu0 (!%p195_p3), %v1427_v4  ;;  %v1351_v5 = vld [vmem:[%s1668_s1 + $0x8] sm:$0xff] (!%p195_p3)   ;;  %v1354_v8 = vld [vmem:[%s1668_s1 + $0x10] sm:$0xff] (!%p195_p3)   ;;  %p232_p4 = scmp.lt.s32.totalorder (!%p195_p3), %s1150_s9, 47 }
   0x8   : > { %v1349_v2 = vld [vmem:[%s1668_s1 + $0x80] sm:$0xff] (!%p195_p3)   ;;  %1208 = vmatpush3.bf16.msra.mxu0 (!%p195_p3), %v1348_v1  ;;  %1346 = vset.pattern.permute.xlu1 (!%p195_p3), %v1427_v4  ;;  %v1352_v6 = vld [vmem:[%s1668_s1 + $0x88] sm:$0xff] (!%p195_p3)   ;;  %v1355_v9 = vld [vmem:[%s1668_s1 + $0x90] sm:$0xff] (!%p195_p3)  }
   0x9   : > { %1287 = vmatprep.subr.bf16.mxu1 (!%p195_p3), %v1349_v2  ;;  %1209 = vmatprep.subr.bf16.mxu0 (!%p195_p3), %v1350_v3  ;;  %v1356_v10 = vld [vmem:[%s1668_s1 + $0x58] sm:$0xff] (!%p195_p3)   ;;  %v1359_v13 = vld [vmem:[%s1668_s1 + $0x60] sm:$0xff] (!%p195_p3)   ;;  %v1362_v16 = vld [vmem:[%s1668_s1 + $0x68] sm:$0xff] (!%p195_p3)  }
   0xa   : > { %1288 = vmatpush3.bf16.msra.mxu1 (!%p195_p3), %v1349_v2  ;;  %v1357_v11 = vld [vmem:[%s1668_s1 + $0x18] sm:$0xff] (!%p195_p3)   ;;  %v1361_v14 = vld [vmem:[%s1668_s1 + $0xa0] sm:$0xff] (!%p195_p3)   ;;  %v1364_v17 = vld [vmem:[%s1668_s1 + $0xa8] sm:$0xff] (!%p195_p3)  }
   0xb   : > { %1289 = vmatprep.subr.bf16.mxu1 (!%p195_p3), %v1352_v6  ;;  %v1358_v12 = vld [vmem:[%s1668_s1 + $0x98] sm:$0xff] (!%p195_p3)   ;;  %v1360_v15 = vld [vmem:[%s1668_s1 + $0x20] sm:$0xff] (!%p195_p3)   ;;  %v1363_v18 = vld [vmem:[%s1668_s1 + $0x28] sm:$0xff] (!%p195_p3)  }
   0xc   : > { %1210 = vmatpush3.bf16.msra.mxu0 (!%p195_p3), %v1351_v5  ;;  %v1365_v19 = vld [vmem:[%s1668_s1 + $0x70] sm:$0xff] (!%p195_p3)   ;;  %v1368_v22 = vld [vmem:[%s1668_s1 + $0x78] sm:$0xff] (!%p195_p3)  }
   0xd   : > { %1211 = vmatprep.subr.bf16.mxu0 (!%p195_p3), %v1353_v7  ;;  %v1366_v20 = vld [vmem:[%s1668_s1 + $0x30] sm:$0xff] (!%p195_p3)   ;;  %v1370_v23 = vld [vmem:[%s1668_s1 + $0xb8] sm:$0xff] (!%p195_p3)  }
   0xe   : > { %1290 = vmatpush3.bf16.msra.mxu1 %v1352_v6  ;;  %s1677_s9 = smov (!%p232_p4, %s1150_s9), 47  ;;  %v1367_v21 = vld [vmem:[%s1668_s1 + $0xb0] sm:$0xff]   ;;  %v1369_v26 = vld [vmem:[%s1668_s1 + $0x38] sm:$0xff]  }
   0xf   : > { %1291 = vmatprep.subr.bf16.mxu1 %v1355_v9  ;;  %s1319_s5 = smul.u32 12, %s1677_s9  ;;  %s1153_s27 = sshll.u32 %s1677_s9, 3 }
  0x10   : > { %1212 = vmatpush3.bf16.msra.mxu0 %v1354_v8  ;;  %s1568_s30 = scalar_lea.vmem %s1669_s2, %s1153_s27  ;;  %s1613_s10 = scalar_lea.vmem %s1671_s4, %s1153_s27 }
  0x11   : > { %1213 = vmatprep.subr.bf16.mxu0 %v1356_v10  ;;  %s1543_s21 = scalar_lea.vmem %s1667_s0, %s1319_s5  ;;  %v893_v35 = vld [vmem:[%s1568_s30] sm:$0xff]  ;;  %v895_v36 = vld [vmem:[%s1568_s30 + $0x10] sm:$0xff]  ;;  %v894_v37 = vld [vmem:[%s1568_s30 + $0x8] sm:$0xff] }
  0x12   : > { %1292 = vmatpush3.bf16.msra.mxu1 %v1355_v9  ;;  %v1373_v24 = vld [vmem:[%s1543_s21 + $0x4] ss:$12 sps:$4 sm:$0xff]   ;;  %v1374_v25 = vld [vmem:[%s1543_s21 + $0x8] ss:$12 sps:$4 sm:$0xff]   ;;  %v1371_v27 = vld [vmem:[%s1543_s21] ss:$12 sps:$4 sm:$0xff]   ;;  %911 = vperm.xlu0 %1345, %v893_v35  }
  0x13   : > { %1293 = vmatprep.subr.bf16.mxu1 %v1358_v12  ;;  %680 = vmatprep.mubr.bf16.mxu0 %v1373_v24  ;;  %v1376_v28 = vld [vmem:[%s1543_s21 + $0x1c] ss:$12 sps:$4 sm:$0xff]   ;;  %v1375_v29 = vld [vmem:[%s1543_s21 + $0x20] ss:$12 sps:$4 sm:$0xff]   ;;  %v1382_v30 = vld [vmem:[%s1543_s21 + $0x38] ss:$12 sps:$4 sm:$0xff]  }
  0x14   : > { %1214 = vmatpush3.bf16.msra.mxu0 %v1357_v11  ;;  %1303 = vmatprep.mubr.bf16.mxu1 %v1374_v25  ;;  %v1378_v31 = vld [vmem:[%s1543_s21 + $0x18] ss:$12 sps:$4 sm:$0xff]   ;;  %v1379_v32 = vld [vmem:[%s1543_s21 + $0x34] ss:$12 sps:$4 sm:$0xff]   ;;  %v1383_v33 = vld [vmem:[%s1543_s21 + $0x50] ss:$12 sps:$4 sm:$0xff]  }
  0x15   : > { %1215 = vmatprep.subr.bf16.mxu0 %v1359_v13  ;;  %v1390_v34 = vld [vmem:[%s1543_s21 + $0x68] ss:$12 sps:$4 sm:$0xff]   ;;  %921 = vperm.xlu1 %1346, %v895_v36   ;;  %v896_v38 = vld [vmem:[%s1568_s30 + $0x18] sm:$0xff]  ;;  %v1391_v41 = vld [vmem:[%s1543_s21 + $0x80] ss:$12 sps:$4 sm:$0xff]  }
  0x16   : > { %1294 = vmatpush3.bf16.msra.mxu1 %v1358_v12  ;;  %v1381_v39 = vld [vmem:[%s1543_s21 + $0x30] ss:$12 sps:$4 sm:$0xff]   ;;  %v1384_v40 = vld [vmem:[%s1543_s21 + $0x4c] ss:$12 sps:$4 sm:$0xff]   ;;  %916 = vperm.xlu0 %1345, %v894_v37   ;;  %v897_v42 = vld [vmem:[%s1568_s30 + $0x20] sm:$0xff] }
  0x17   : > { %1295 = vmatprep.subr.bf16.mxu1 %v1361_v14  ;;  %v1398_v43 = vld [vmem:[%s1543_s21 + $0x98] ss:$12 sps:$4 sm:$0xff]   ;;  %v898_v44 = vld [vmem:[%s1568_s30 + $0x28] sm:$0xff]  ;;  %v899_v45 = vld [vmem:[%s1568_s30 + $0x30] sm:$0xff] }
  0x18   : > { %1216 = vmatpush3.bf16.msra.mxu0 %v1360_v15  ;;  %v900_v46 = vld [vmem:[%s1568_s30 + $0x38] sm:$0xff]  ;;  %v1386_v47 = vld [vmem:[%s1543_s21 + $0x48] ss:$12 sps:$4 sm:$0xff]   ;;  %v1387_v48 = vld [vmem:[%s1543_s21 + $0x64] ss:$12 sps:$4 sm:$0xff]  }
  0x19   : > { %1217 = vmatprep.subr.bf16.mxu0 %v1362_v16  ;;  %926 = vperm.xlu1 %1346, %v896_v38   ;;  %v1399_v49 = vld [vmem:[%s1543_s21 + $0xb0] ss:$12 sps:$4 sm:$0xff]   ;;  %v901_v50 = vld [vmem:[%s1568_s30 + $0x40] sm:$0xff]  ;;  %v902_v51 = vld [vmem:[%s1568_s30 + $0x48] sm:$0xff] }
  0x1a   : > { %1296 = vmatpush3.bf16.msra.mxu1 %v1361_v14  ;;  %931 = vperm.xlu0 %1345, %v897_v42   ;;  %v903_v52 = vld [vmem:[%s1568_s30 + $0x50] sm:$0xff]  ;;  %v904_v53 = vld [vmem:[%s1568_s30 + $0x58] sm:$0xff]  ;;  %v1389_v54 = vld [vmem:[%s1543_s21 + $0x60] ss:$12 sps:$4 sm:$0xff]  }
  0x1b   : > { %1297 = vmatprep.subr.bf16.mxu1 %v1364_v17  ;;  %v1392_v55 = vld [vmem:[%s1543_s21 + $0x7c] ss:$12 sps:$4 sm:$0xff]   ;;  %v905_v56 = vld [vmem:[%s1568_s30 + $0x60] sm:$0xff]  ;;  %v907_v58 = vld [vmem:[%s1568_s30 + $0x70] sm:$0xff] }
  0x1c   : > { %1218 = vmatpush3.bf16.msra.mxu0 %v1363_v18  ;;  %v906_v57 = vld [vmem:[%s1568_s30 + $0x68] sm:$0xff]  ;;  %v908_v59 = vld [vmem:[%s1568_s30 + $0x78] sm:$0xff]  ;;  %v1395_v61 = vld [vmem:[%s1543_s21 + $0x94] ss:$12 sps:$4 sm:$0xff]  }
  0x1d   : > { %1219 = vmatprep.subr.bf16.mxu0 %v1365_v19  ;;  %936 = vperm.xlu1 %1346, %v898_v44   ;;  %v1394_v60 = vld [vmem:[%s1543_s21 + $0x78] ss:$12 sps:$4 sm:$0xff]   ;;  %v1397_v62 = vld [vmem:[%s1543_s21 + $0x90] ss:$12 sps:$4 sm:$0xff]   ;;  %v1402_v0 = vld [vmem:[%s1543_s21 + $0xa8] ss:$12 sps:$4 sm:$0xff]  }
  0x1e   : > { %1298 = vmatpush3.bf16.msra.mxu1 %v1364_v17  ;;  %941 = vperm.xlu0 %1345, %v899_v45   ;;  %v1400_v63 = vld [vmem:[%s1543_s21 + $0xac] ss:$12 sps:$4 sm:$0xff]   ;;  %v1605_v12 = vld [vmem:[%s1670_s3] ss:$0 sm:$0xff] }
  0x1f   : > { %1299 = vmatprep.subr.bf16.mxu1 %v1367_v21 }
  0x20   : > { %1220 = vmatpush3.bf16.msra.mxu0 %v1366_v20 }
  0x21   : > { %1221 = vmatprep.subr.bf16.mxu0 %v1368_v22  ;;  %946 = vperm.xlu1 %1346, %v900_v46  }
  0x22   : > { %1300 = vmatpush3.bf16.msra.mxu1 %v1367_v21  ;;  %951 = vperm.xlu0 %1345, %v901_v50  }
  0x23   : > { %1301 = vmatprep.subr.bf16.mxu1 %v1370_v23 }
  0x24   : > { %1222 = vmatpush3.bf16.msra.mxu0 %v1369_v26 }
  0x25   : > { %956 = vperm.xlu1 %1346, %v902_v51  }
  0x26   : > { %1302 = vmatpush3.bf16.msra.mxu1 %v1370_v23  ;;  %961 = vperm.xlu0 %1345, %v903_v52  }
  0x27   : > { %681 = vmatmul.mubr.bf16.vlgmr.msra.gmra.mrb[0].mxu0 %v1371_v27 }
  0x28   : > { %688 = vmatprep.mubr.bf16.mxu0 %v1376_v28 }
  0x29   : > { %1304 = vmatmul.mubr.bf16.vlgmr.msra.gmra.mrb[0].mxu1 %v1375_v29  ;;  %966 = vperm.xlu1 %1346, %v904_v53  }
  0x2a   : > { %1307 = vmatprep.mubr.bf16.mxu1 %v1382_v30  ;;  %971 = vperm.xlu0 %1345, %v905_v56  }
  0x2d   : > { %976 = vperm.xlu1 %1346, %v906_v57  }
  0x2e   : > { %981 = vperm.xlu0 %1345, %v907_v58  }
  0x2f   : > { %689 = vmatmul.mubr.bf16.gmra.mrb[4].mxu0 %v1378_v31 }
  0x30   : > { %696 = vmatprep.mubr.bf16.mxu0 %v1379_v32 }
  0x31   : > { %1308 = vmatmul.mubr.bf16.gmra.mrb[4].mxu1 %v1383_v33  ;;  %986 = vperm.xlu1 %1346, %v908_v59  }
  0x32   : > { %1311 = vmatprep.mubr.bf16.mxu1 %v1390_v34 }
  0x37   : > { %697 = vmatmul.mubr.bf16.gmra.mrb[8].mxu0 %v1381_v39 }
  0x38   : > { %704 = vmatprep.mubr.bf16.mxu0 %v1384_v40 }
  0x39   : > { %1312 = vmatmul.mubr.bf16.gmra.mrb[8].mxu1 %v1391_v41 }
  0x3a   : > { %1315 = vmatprep.mubr.bf16.mxu1 %v1398_v43 }
  0x3f   : > { %705 = vmatmul.mubr.bf16.gmra.mrb[12].mxu0 %v1386_v47 }
  0x40   : > { %712 = vmatprep.mubr.bf16.mxu0 %v1387_v48 }
  0x41   : > { %1316 = vmatmul.mubr.bf16.gmra.mrb[12].mxu1 %v1399_v49 }
  0x47   : > { %713 = vmatmul.mubr.bf16.gmra.mrb[16].mxu0 %v1389_v54 }
  0x48   : > { %720 = vmatprep.mubr.bf16.mxu0 %v1392_v55 }
  0x4f   : > { %721 = vmatmul.mubr.bf16.gmra.mrb[20].mxu0 %v1394_v60 }
  0x50   : > { %728 = vmatprep.mubr.bf16.mxu0 %v1395_v61 }
  0x57   : > { %729 = vmatmul.mubr.bf16.gmra.mrb[24].mxu0 %v1397_v62 }
  0x58   : > { %736 = vmatprep.mubr.bf16.mxu0 %v1400_v63 }
  0x5f   : > { %737 = vmatmul.mubr.bf16.gmra.mrb[28].mxu0 %v1402_v0 }
  0x91   : > { %v912_v1 = vpop.permute.xlu0 %911 }
  0x94   : > { %v922_v20 = vpop.permute.xlu1 %921 }
  0x95   : > { %v917_v14 = vpop.permute.xlu0 %916 }
  0x98   : > { %v927_v36 = vpop.permute.xlu1 %926 }
  0x99   : > { %v932_v52 = vpop.permute.xlu0 %931 }
  0x9c   : > { %v937_v56 = vpop.permute.xlu1 %936 }
  0xfa   : > { %v1223_v2 = vpop.f32.mrb[0].mxu0 }
  0xfb   : > { %v1224_v3 = vpop.f32.mrb[1].mxu0 }
  0xfc   : > { %v1225_v4 = vadd.f32 %v1224_v3, %v1223_v2  ;;  %v1226_v5 = vpop.f32.mrb[2].mxu0  ;;  %v1305_v6 = vpop.f32.mrb[0].mxu1 }
  0xfd   : > { %v1227_v7 = vpop.f32.mrb[3].mxu0  ;;  %v779_v8 = vpop.f32.mrb[1].mxu1 }
  0xfe   : > { %v1228_v9 = vadd.f32 %v1227_v7, %v1226_v5  ;;  %v780_v10 = vadd.f32 %v1225_v4, %v779_v8  ;;  %v1306_v11 = vpop.f32.mrb[2].mxu1  ;;  %v942_v8 = vpop.permute.xlu0 %941 }
  0xff   : > { %v782_v13 = vpop.f32.mrb[3].mxu1 }
 0x100   : > { %v989_v15 = vmul.f32 %v912_v1, %v780_v10  ;;  %v783_v16 = vadd.f32 %v1228_v9, %v782_v13  ;;  %v947_v13 = vpop.permute.xlu1 %946 }
 0x102   : > { %v1012_v17 = vadd.f32 %v1605_v12, %v989_v15  ;;  %v990_v18 = vmul.f32 %v917_v14, %v783_v16  ;;  %v1229_v19 = vpop.f32.mrb[4].mxu0 }
 0x103   : > { %v1230_v21 = vpop.f32.mrb[5].mxu0 }
 0x104   : > { %v1028_v22 = vmax.f32 %v1012_v17, 0.0  ;;  %v1013_v23 = vadd.f32 %v1605_v12, %v990_v18  ;;  %v1231_v24 = vadd.f32 %v1230_v21, %v1229_v19  ;;  %v1232_v25 = vpop.f32.mrb[6].mxu0  ;;  %v1309_v26 = vpop.f32.mrb[4].mxu1 }
 0x105   : > { %v1233_v27 = vpop.f32.mrb[7].mxu0  ;;  %v795_v28 = vpop.f32.mrb[5].mxu1 }
 0x106   : > { %1044 = vst [vmem:[%s1613_s10] sm:$0xff] %v1028_v22  ;;  %v1029_v29 = vmax.f32 %v1013_v23, 0.0  ;;  %v788_v30 = vadd.f32 %v1305_v6, %v1231_v24  ;;  %v1234_v31 = vadd.f32 %v1233_v27, %v1232_v25  ;;  %v1310_v32 = vpop.f32.mrb[6].mxu1 }
 0x107   : > { %v798_v33 = vpop.f32.mrb[7].mxu1 }
 0x108   : > { %1045 = vst [vmem:[%s1613_s10 + $0x8] sm:$0xff] %v1029_v29  ;;  %v991_v34 = vmul.f32 %v922_v20, %v788_v30  ;;  %v791_v35 = vadd.f32 %v1306_v11, %v1234_v31  ;;  %v957_v29 = vpop.permute.xlu1 %956 }
 0x10a   : > { %v1014_v37 = vadd.f32 %v1605_v12, %v991_v34  ;;  %v992_v38 = vmul.f32 %v927_v36, %v791_v35  ;;  %v1235_v39 = vpop.f32.mrb[8].mxu0 }
 0x10b   : > { %v1236_v40 = vpop.f32.mrb[9].mxu0 }
 0x10c   : > { %v1030_v41 = vmax.f32 %v1014_v37, 0.0  ;;  %v1015_v42 = vadd.f32 %v1605_v12, %v992_v38  ;;  %v1237_v43 = vadd.f32 %v1236_v40, %v1235_v39  ;;  %v1238_v44 = vpop.f32.mrb[10].mxu0  ;;  %v1620_v45 = vpop.f32.mrb[8].mxu1 }
 0x10d   : > { %v1239_v46 = vpop.f32.mrb[11].mxu0  ;;  %v811_v47 = vpop.f32.mrb[9].mxu1 }
 0x10e   : > { %1046 = vst [vmem:[%s1613_s10 + $0x10] sm:$0xff] %v1030_v41  ;;  %v1031_v48 = vmax.f32 %v1015_v42, 0.0  ;;  %v1240_v49 = vadd.f32 %v1239_v46, %v1238_v44  ;;  %v796_v50 = vadd.f32 %v1237_v43, %v795_v28  ;;  %v1623_v51 = vpop.f32.mrb[10].mxu1  ;;  %v967_v46 = vpop.permute.xlu1 %966 }
 0x10f   : > { %v814_v53 = vpop.f32.mrb[11].mxu1 }
 0x110   : > { %1047 = vst [vmem:[%s1613_s10 + $0x18] sm:$0xff] %v1031_v48  ;;  %v993_v54 = vmul.f32 %v932_v52, %v796_v50  ;;  %v799_v55 = vadd.f32 %v1240_v49, %v798_v33 }
 0x112   : > { %v1016_v57 = vadd.f32 %v1605_v12, %v993_v54  ;;  %v994_v58 = vmul.f32 %v937_v56, %v799_v55  ;;  %v1241_v59 = vpop.f32.mrb[12].mxu0 }
 0x113   : > { %v1242_v60 = vpop.f32.mrb[13].mxu0 }
 0x114   : > { %v1032_v61 = vmax.f32 %v1016_v57, 0.0  ;;  %v1017_v62 = vadd.f32 %v1605_v12, %v994_v58  ;;  %v1243_v63 = vadd.f32 %v1242_v60, %v1241_v59  ;;  %v1244_v0 = vpop.f32.mrb[14].mxu0  ;;  %v1628_v1 = vpop.f32.mrb[12].mxu1 }
 0x115   : > { %v1245_v2 = vpop.f32.mrb[15].mxu0  ;;  %v827_v3 = vpop.f32.mrb[13].mxu1 }
 0x116   : > { %1048 = vst [vmem:[%s1613_s10 + $0x20] sm:$0xff] %v1032_v61  ;;  %v1033_v4 = vmax.f32 %v1017_v62, 0.0  ;;  %v804_v5 = vadd.f32 %v1309_v26, %v1243_v63  ;;  %v1246_v6 = vadd.f32 %v1245_v2, %v1244_v0  ;;  %v1631_v7 = vpop.f32.mrb[14].mxu1  ;;  %v952_v26 = vpop.permute.xlu0 %951 }
 0x117   : > { %v830_v9 = vpop.f32.mrb[15].mxu1  ;;  %v977_v61 = vpop.permute.xlu1 %976 }
 0x118   : > { %1049 = vst [vmem:[%s1613_s10 + $0x28] sm:$0xff] %v1033_v4  ;;  %v995_v10 = vmul.f32 %v942_v8, %v804_v5  ;;  %v807_v11 = vadd.f32 %v1310_v32, %v1246_v6 }
 0x11a   : > { %v1018_v14 = vadd.f32 %v1605_v12, %v995_v10  ;;  %v996_v15 = vmul.f32 %v947_v13, %v807_v11  ;;  %v1247_v16 = vpop.f32.mrb[16].mxu0  ;;  %v962_v42 = vpop.permute.xlu0 %961 }
 0x11b   : > { %v1248_v17 = vpop.f32.mrb[17].mxu0 }
 0x11c   : > { %v1034_v18 = vmax.f32 %v1018_v14, 0.0  ;;  %v1019_v19 = vadd.f32 %v1605_v12, %v996_v15  ;;  %v1249_v20 = vadd.f32 %v1248_v17, %v1247_v16  ;;  %v1250_v21 = vpop.f32.mrb[18].mxu0  ;;  %v987_v16 = vpop.permute.xlu1 %986 }
 0x11d   : > { %v1251_v22 = vpop.f32.mrb[19].mxu0 }
 0x11e   : > { %1050 = vst [vmem:[%s1613_s10 + $0x30] sm:$0xff] %v1034_v18  ;;  %v1035_v23 = vmax.f32 %v1019_v19, 0.0  ;;  %v1252_v24 = vadd.f32 %v1251_v22, %v1250_v21  ;;  %v812_v25 = vadd.f32 %v1249_v20, %v811_v47  ;;  %v972_v59 = vpop.permute.xlu0 %971 }
 0x120   : > { %1051 = vst [vmem:[%s1613_s10 + $0x38] sm:$0xff] %v1035_v23  ;;  %v997_v27 = vmul.f32 %v952_v26, %v812_v25  ;;  %v815_v28 = vadd.f32 %v1252_v24, %v814_v53 }
 0x122   : > { %v1020_v30 = vadd.f32 %v1605_v12, %v997_v27  ;;  %v998_v31 = vmul.f32 %v957_v29, %v815_v28  ;;  %v1253_v32 = vpop.f32.mrb[20].mxu0  ;;  %v982_v13 = vpop.permute.xlu0 %981 }
 0x123   : > { %v1254_v33 = vpop.f32.mrb[21].mxu0 }
 0x124   : > { %v1036_v34 = vmax.f32 %v1020_v30, 0.0  ;;  %v1021_v35 = vadd.f32 %v1605_v12, %v998_v31  ;;  %v1255_v36 = vadd.f32 %v1254_v33, %v1253_v32  ;;  %v1256_v37 = vpop.f32.mrb[22].mxu0 }
 0x125   : > { %v1257_v38 = vpop.f32.mrb[23].mxu0 }
 0x126   : > { %1052 = vst [vmem:[%s1613_s10 + $0x40] sm:$0xff] %v1036_v34  ;;  %v1037_v39 = vmax.f32 %v1021_v35, 0.0  ;;  %v820_v40 = vadd.f32 %v1620_v45, %v1255_v36  ;;  %v1258_v41 = vadd.f32 %v1257_v38, %v1256_v37 }
 0x128   : > { %1053 = vst [vmem:[%s1613_s10 + $0x48] sm:$0xff] %v1037_v39  ;;  %v999_v43 = vmul.f32 %v962_v42, %v820_v40  ;;  %v823_v44 = vadd.f32 %v1623_v51, %v1258_v41 }
 0x12a   : > { %v1022_v47 = vadd.f32 %v1605_v12, %v999_v43  ;;  %v1000_v48 = vmul.f32 %v967_v46, %v823_v44  ;;  %v1259_v49 = vpop.f32.mrb[24].mxu0 }
 0x12b   : > { %v1260_v50 = vpop.f32.mrb[25].mxu0 }
 0x12c   : > { %v1038_v52 = vmax.f32 %v1022_v47, 0.0  ;;  %v1023_v53 = vadd.f32 %v1605_v12, %v1000_v48  ;;  %v1261_v54 = vadd.f32 %v1260_v50, %v1259_v49  ;;  %v1262_v55 = vpop.f32.mrb[26].mxu0 }
 0x12d   : > { %v1263_v45 = vpop.f32.mrb[27].mxu0 }
 0x12e   : > { %1054 = vst [vmem:[%s1613_s10 + $0x50] sm:$0xff] %v1038_v52  ;;  %v1039_v56 = vmax.f32 %v1023_v53, 0.0  ;;  %v1264_v57 = vadd.f32 %v1263_v45, %v1262_v55  ;;  %v828_v58 = vadd.f32 %v1261_v54, %v827_v3 }
 0x130   : > { %1055 = vst [vmem:[%s1613_s10 + $0x58] sm:$0xff] %v1039_v56  ;;  %v1001_v51 = vmul.f32 %v972_v59, %v828_v58  ;;  %v831_v60 = vadd.f32 %v1264_v57, %v830_v9 }
 0x132   : > { %v1024_v62 = vadd.f32 %v1605_v12, %v1001_v51  ;;  %v1002_v63 = vmul.f32 %v977_v61, %v831_v60  ;;  %v1265_v0 = vpop.f32.mrb[28].mxu0 }
 0x133   : > { %v1266_v2 = vpop.f32.mrb[29].mxu0 }
 0x134   : > { %v1040_v4 = vmax.f32 %v1024_v62, 0.0  ;;  %v1025_v5 = vadd.f32 %v1605_v12, %v1002_v63  ;;  %v1267_v6 = vadd.f32 %v1266_v2, %v1265_v0  ;;  %v1268_v8 = vpop.f32.mrb[30].mxu0 }
 0x135   : > { %v1269_v10 = vpop.f32.mrb[31].mxu0 }
 0x136   : > { %1056 = vst [vmem:[%s1613_s10 + $0x60] sm:$0xff] %v1040_v4  ;;  %v1041_v3 = vmax.f32 %v1025_v5, 0.0  ;;  %v836_v11 = vadd.f32 %v1628_v1, %v1267_v6  ;;  %v1270_v9 = vadd.f32 %v1269_v10, %v1268_v8 }
 0x138   : > { %1057 = vst [vmem:[%s1613_s10 + $0x68] sm:$0xff] %v1041_v3  ;;  %v1003_v14 = vmul.f32 %v982_v13, %v836_v11  ;;  %v839_v15 = vadd.f32 %v1631_v7, %v1270_v9 }
 0x13a   : > { %v1026_v17 = vadd.f32 %v1605_v12, %v1003_v14  ;;  %v1004_v18 = vmul.f32 %v987_v16, %v839_v15 }
 0x13c   : > { %v1042_v19 = vmax.f32 %v1026_v17, 0.0  ;;  %v1027_v20 = vadd.f32 %v1605_v12, %v1004_v18 }
 0x13e   : > { %1058 = vst [vmem:[%s1613_s10 + $0x70] sm:$0xff] %v1042_v19  ;;  %v1043_v21 = vmax.f32 %v1027_v20, 0.0 }
 0x140   : > { %1059 = vst [vmem:[%s1613_s10 + $0x78] sm:$0xff] %v1043_v21 }
 0x141 PF: > { %s14_s17 = sadd.s32 1, %s1425_s17   ;;  %s1672_s15 = smov %s1421_s16 }
 0x142   : > { %p11_p5 = scmp.ge.s32.totalorder %s14_s17, 5   ;;  %s1673_s16 = smov %s1675_s18 }
 0x144   :  { %13 = sbr.rel (!%p11_p5) target bundleno = 2 (0x2), region = 78 }

</bundles_post_ra>
